<compile_context>
chip_gen: v6e
topology: v6e:2x2x1
jax: 0.10.0
libtpu: 0.0.40
codegen_flags: <defaults>
</compile_context>

<pallas_src>
import functools

import jax
import jax.numpy as jnp
from jax.experimental import pallas as pl
from jax.experimental.pallas import tpu as pltpu


def _round_up(x, m):
    return (x + m - 1) // m * m


def _vmem_bytes_estimate(tile_n, d, k_pad, emit_dist):
    """Rough per-step VMEM footprint (double-buffered I/O + temporaries)."""
    f32 = 4
    total = 0
    total += 2 * tile_n * d * f32          # x tile (double-buffered)
    total += 2 * k_pad * d * f32           # codebook
    total += 2 * k_pad * f32               # w2
    total += 2 * tile_n * d * f32          # quantized out
    total += 2 * tile_n * f32              # idx out
    total += 2 * (k_pad + 8) * f32         # counts + sqerr accumulators
    if emit_dist:
        total += 2 * tile_n * k_pad * f32  # distances out
    total += 4 * tile_n * k_pad * f32      # dist / cand / enc temporaries
    total += 2 * tile_n * d * f32          # (q - x)^2 temporaries
    return total


def _vq_kernel(x_ref, w_ref, w2_ref,
               idx_ref, q_ref, sqerr_ref, counts_ref, *maybe_dist,
               n_valid, tile_n, steps, emit_dist):
    """One grid step processes a (tile_n, D) tile of flattened frames."""
    dist_ref = maybe_dist[0] if emit_dist else None

    c = pl.program_id(0)        # megacore split ("parallel")
    i = pl.program_id(1)        # steps within the split ("arbitrary")

    x = x_ref[...].astype(jnp.float32)        # (TN, D)
    w = w_ref[...].astype(jnp.float32)        # (Kp, D)
    w2 = w2_ref[...]                          # (1, Kp); padded rows ~1e30
    tn, d = x.shape
    kp = w.shape[0]

    # distances = ||x||^2 + ||w||^2 - 2 x·w  (contract on D, no transpose)
    x2 = jnp.sum(x * x, axis=1, keepdims=True)                       # (TN, 1)
    xw = jax.lax.dot_general(x, w, (((1,), (1,)), ((), ())),
                             preferred_element_type=jnp.float32)     # (TN, Kp)
    dist = x2 + w2 - 2.0 * xw

    if emit_dist:
        dist_ref[...] = dist

    # argmin over the (padded) codebook axis — first minimal index.
    dmin = jnp.min(dist, axis=1, keepdims=True)                      # (TN, 1)
    iota_k = jax.lax.broadcasted_iota(jnp.int32, (tn, kp), 1)
    cand = jnp.where(dist == dmin, iota_k, kp)
    idx_1d = jnp.min(cand, axis=1).astype(jnp.int32)                 # (TN,)
    idx_ref[...] = idx_1d[None, None, :]                             # lane-dense

    # one-hot (f32) and codebook lookup on the MXU.
    enc = (iota_k == idx_1d[:, None]).astype(jnp.float32)            # (TN, Kp)
    q = jnp.dot(enc, w, preferred_element_type=jnp.float32)          # (TN, D)
    q_ref[...] = q.astype(q_ref.dtype)

    # mask rows that are padding of the flattened frame axis.
    row0 = (c * steps + i) * tile_n
    rows = row0 + jax.lax.broadcasted_iota(jnp.int32, (tn, 1), 0)
    valid = (rows < n_valid).astype(jnp.float32)                     # (TN, 1)

    err = jnp.sum(((q - x) ** 2) * valid)
    cnt = jnp.sum(enc * valid, axis=0, keepdims=True)                # (1, Kp)

    @pl.when(i == 0)
    def _():
        sqerr_ref[...] = jnp.zeros_like(sqerr_ref)
        counts_ref[...] = jnp.zeros_like(counts_ref)

    sqerr_ref[...] = sqerr_ref[...] + err
    counts_ref[...] = counts_ref[...] + cnt[None]


@functools.partial(
    jax.jit,
    static_argnames=("commitment_cost", "tile_n_max", "num_splits", "emit_dist"))
def vector_quantizer_ema_forward(inputs, embedding_weight,
                                 commitment_cost=0.25,
                                 tile_n_max=1024, num_splits=2,
                                 emit_dist=True):
    """Eval-mode forward of VectorQuantizerEMA.

    Args:
      inputs:            (B, T, D) float32
      embedding_weight:  (K, D) float32 codebook
    Returns:
      (vq_loss, quantized, perplexity, encodings, distances_or_None,
       encoding_indices)
    """
    b, t, d = inputs.shape
    k = embedding_weight.shape[0]
    n = b * t

    # ---- static tiling / padding decisions ---------------------------------
    k_pad = _round_up(k, 128)

    tile_n = max(128, min(int(tile_n_max), _round_up(n, 128)))
    tile_n = _round_up(tile_n, 128)
    budget = 28 * 1024 * 1024   # keep requested VMEM v7x-safe (64 MiB physical)
    while tile_n > 128 and _vmem_bytes_estimate(tile_n, d, k_pad, emit_dist) > budget:
        tile_n -= 128

    splits = max(1, min(int(num_splits), -(-n // tile_n)))
    steps = -(-n // (tile_n * splits))
    n_pad = steps * tile_n * splits
    num_blocks = splits * steps

    est = _vmem_bytes_estimate(tile_n, d, k_pad, emit_dist)
    vmem_limit = int(min(56 * 1024 * 1024, max(32 * 1024 * 1024, 2 * est)))

    # ---- pad inputs / codebook ---------------------------------------------
    flat = inputs.reshape(n, d)
    flat = jnp.pad(flat, ((0, n_pad - n), (0, 0)))

    w_pad = jnp.pad(embedding_weight, ((0, k_pad - k), (0, 0)))
    w2 = jnp.sum(embedding_weight.astype(jnp.float32) ** 2, axis=1)
    w2 = jnp.concatenate(
        [w2, jnp.full((k_pad - k,), 1e30, jnp.float32)])[None, :]   # (1, Kp)

    # ---- pallas_call --------------------------------------------------------
    out_shape = [
        jax.ShapeDtypeStruct((num_blocks, 1, tile_n), jnp.int32),     # idx
        jax.ShapeDtypeStruct((n_pad, d), inputs.dtype),               # quantized
        jax.ShapeDtypeStruct((splits, 1, 1), jnp.float32),            # sqerr
        jax.ShapeDtypeStruct((splits, 1, k_pad), jnp.float32),        # counts
    ]
    out_specs = [
        pl.BlockSpec((1, 1, tile_n), lambda c, i: (c * steps + i, 0, 0)),
        pl.BlockSpec((tile_n, d), lambda c, i: (c * steps + i, 0)),
        pl.BlockSpec((1, 1, 1), lambda c, i: (c, 0, 0)),
        pl.BlockSpec((1, 1, k_pad), lambda c, i: (c, 0, 0)),
    ]
    if emit_dist:
        out_shape.append(jax.ShapeDtypeStruct((n_pad, k_pad), jnp.float32))
        out_specs.append(
            pl.BlockSpec((tile_n, k_pad), lambda c, i: (c * steps + i, 0)))

    grid_spec = pltpu.PrefetchScalarGridSpec(
        num_scalar_prefetch=0,
        grid=(splits, steps),
        in_specs=[
            pl.BlockSpec((tile_n, d), lambda c, i: (c * steps + i, 0)),  # x
            pl.BlockSpec((k_pad, d), lambda c, i: (0, 0)),               # W
            pl.BlockSpec((1, k_pad), lambda c, i: (0, 0)),               # ||W||^2
        ],
        out_specs=out_specs,
    )

    kernel = functools.partial(_vq_kernel, n_valid=n, tile_n=tile_n,
                               steps=steps, emit_dist=emit_dist)

    results = pl.pallas_call(
        kernel,
        out_shape=tuple(out_shape),
        grid_spec=grid_spec,
        compiler_params=pltpu.CompilerParams(
            dimension_semantics=("parallel", "arbitrary"),
            vmem_limit_bytes=vmem_limit),
    )(flat, w_pad, w2)

    if emit_dist:
        idx_b, q_flat, sqerr_p, counts_p, dist_pad = results
    else:
        idx_b, q_flat, sqerr_p, counts_p = results
        dist_pad = None

    # ---- glue (scalar / cheap) ---------------------------------------------
    idx_flat = idx_b.reshape(n_pad)[:n]
    encoding_indices = idx_flat[:, None]
    # exact reconstruction of the one-hot encodings (kernel no longer writes
    # the dense (N,K) matrix to HBM); DCE'd by XLA if the caller ignores it.
    encodings = jax.nn.one_hot(idx_flat, k, dtype=jnp.float32)

    quantized = q_flat[:n].reshape(b, t, d)

    sqerr = jnp.sum(sqerr_p)
    counts = jnp.sum(counts_p, axis=(0, 1))[:k]

    # e_latent_loss = mean((quantized - inputs)^2); the straight-through
    # estimator makes the returned quantized numerically identical here.
    e_latent_loss = sqerr / jnp.float32(n * d)
    vq_loss = jnp.float32(commitment_cost) * e_latent_loss

    avg_probs = counts / jnp.float32(n)
    perplexity = jnp.exp(-jnp.sum(avg_probs * jnp.log(avg_probs + 1e-10)))

    distances = dist_pad[:n, :k] if emit_dist else None

    return vq_loss, quantized, perplexity, encodings, distances, encoding_indices


def _reference(inputs, w, commitment_cost=0.25):
    """Plain-JAX reference mirroring the PyTorch eval forward."""
    b, t, d = inputs.shape
    flat = inputs.reshape(-1, d)
    dist = (jnp.sum(flat ** 2, axis=1, keepdims=True)
            + jnp.sum(w ** 2, axis=1) - 2.0 * flat @ w.T)
    idx = jnp.argmin(dist, axis=1)
    enc = jax.nn.one_hot(idx, w.shape[0], dtype=jnp.float32)
    q = (enc @ w).reshape(inputs.shape)
    loss = commitment_cost * jnp.mean((q - inputs) ** 2)
    avg = jnp.mean(enc, axis=0)
    perp = jnp.exp(-jnp.sum(avg * jnp.log(avg + 1e-10)))
    return loss, q, perp, enc, dist, idx[:, None]


if __name__ == "__main__":
    # Module config (synthetic, deterministic init — no checkpoint load).
    num_embeddings = 64      # K
    embedding_dim = 32       # D
    commitment_cost = 0.25

    key = jax.random.PRNGKey(0)
    k_in, k_emb, k_in2 = jax.random.split(key, 3)
    emb_w = jax.random.normal(k_emb, (num_embeddings, embedding_dim), jnp.float32)

    # Case 1: B=2, T=64 -> N=128 flattened frames (even tiling).
    inputs = jax.random.normal(k_in, (2, 64, embedding_dim), jnp.float32)
    out = jax.block_until_ready(
        vector_quantizer_ema_forward(inputs, emb_w,
                                     commitment_cost=commitment_cost))
    vq_loss, quantized, perplexity, enc, dist, idx = out
    ref = _reference(inputs, emb_w, commitment_cost)
    assert jnp.allclose(vq_loss, ref[0], atol=1e-5)
    assert jnp.allclose(quantized, ref[1], atol=1e-5)
    assert jnp.allclose(perplexity, ref[2], atol=1e-4)
    assert jnp.allclose(enc, ref[3])
    assert jnp.allclose(dist, ref[4], atol=1e-3)
    assert jnp.array_equal(idx[:, 0], ref[5][:, 0])

    # Case 2: ragged frame count (B=3, T=37 -> N=111), exercises row masking.
    inputs2 = jax.random.normal(k_in2, (3, 37, embedding_dim), jnp.float32)
    out2 = jax.block_until_ready(
        vector_quantizer_ema_forward(inputs2, emb_w,
                                     commitment_cost=commitment_cost))
    ref2 = _reference(inputs2, emb_w, commitment_cost)
    assert jnp.allclose(out2[0], ref2[0], atol=1e-5)
    assert jnp.allclose(out2[1], ref2[1], atol=1e-5)
    assert jnp.allclose(out2[2], ref2[2], atol=1e-4)
    assert jnp.allclose(out2[3], ref2[3])
    assert jnp.allclose(out2[4], ref2[4], atol=1e-3)
    assert jnp.array_equal(out2[5][:, 0], ref2[5][:, 0])

    # Case 3: skip the dense (N,K) distances writeback (HBM-traffic saver).
    out3 = jax.block_until_ready(
        vector_quantizer_ema_forward(inputs, emb_w,
                                     commitment_cost=commitment_cost,
                                     emit_dist=False))
    assert out3[4] is None
    assert jnp.allclose(out3[0], ref[0], atol=1e-5)
    assert jnp.allclose(out3[1], ref[1], atol=1e-5)
    assert jnp.array_equal(out3[5][:, 0], ref[5][:, 0])

    print("KERNEL_OK")
</pallas_src>

<mosaic_0001>
module attributes {stable_mosaic.version = 11 : i64} {
  func.func @_vq_kernel(%arg0: i32, %arg1: i32, %arg2: memref<128x32xf32, #tpu.memory_space<vmem>>, %arg3: memref<128x32xf32, #tpu.memory_space<vmem>>, %arg4: memref<1x128xf32, #tpu.memory_space<vmem>>, %arg5: memref<1x1x128xi32, #tpu.memory_space<vmem>>, %arg6: memref<128x32xf32, #tpu.memory_space<vmem>>, %arg7: memref<1x1x1xf32, #tpu.memory_space<vmem>>, %arg8: memref<1x1x128xf32, #tpu.memory_space<vmem>>, %arg9: memref<128x128xf32, #tpu.memory_space<vmem>>) attributes {dimension_semantics = [#tpu.dimension_semantics<parallel>, #tpu.dimension_semantics<arbitrary>], iteration_bounds = array<i64: 1, 1>, scalar_prefetch = 0 : i64, scratch_operands = 0 : i64, tpu.core_type = #tpu.core_type<tc>, window_params = [{transform_indices = @transform_0, window_bounds = array<i64: 128, 32>}, {pipeline_mode = #tpu.pipeline_mode<synchronous>, transform_indices = @transform_1, window_bounds = array<i64: 128, 32>}, {pipeline_mode = #tpu.pipeline_mode<synchronous>, transform_indices = @transform_2, window_bounds = array<i64: 1, 128>}, {transform_indices = @transform_3, window_bounds = array<i64: 1, 1, 128>}, {transform_indices = @transform_4, window_bounds = array<i64: 128, 32>}, {transform_indices = @transform_5, window_bounds = array<i64: 1, 1, 1>}, {transform_indices = @transform_6, window_bounds = array<i64: 1, 1, 128>}, {transform_indices = @transform_7, window_bounds = array<i64: 128, 128>}]} {
    %c0 = arith.constant 0 : index
    %c0_0 = arith.constant 0 : index
    %0 = vector.load %arg2[%c0, %c0_0] : memref<128x32xf32, #tpu.memory_space<vmem>>, vector<128x32xf32>
    %c0_1 = arith.constant 0 : index
    %c0_2 = arith.constant 0 : index
    %1 = vector.load %arg3[%c0_1, %c0_2] : memref<128x32xf32, #tpu.memory_space<vmem>>, vector<128x32xf32>
    %c0_3 = arith.constant 0 : index
    %c0_4 = arith.constant 0 : index
    %2 = vector.load %arg4[%c0_3, %c0_4] : memref<1x128xf32, #tpu.memory_space<vmem>>, vector<1x128xf32>
    %3 = arith.mulf %0, %0 : vector<128x32xf32>
    %cst = arith.constant dense<0.000000e+00> : vector<128xf32>
    %4 = vector.multi_reduction <add>, %3, %cst [1] : vector<128x32xf32> to vector<128xf32>
    %5 = vector.shape_cast %4 : vector<128xf32> to vector<128x1xf32>
    %cst_5 = arith.constant dense<0.000000e+00> : vector<128x128xf32>
    %6 = tpu.matmul %0, %1, %cst_5 {dimension_numbers = #tpu.dot_dimension_numbers<[1], [1], [0], [0], [0, 0, 1, 0], [], []>} : vector<128x32xf32>, vector<128x32xf32>, vector<128x128xf32> -> vector<128x128xf32>
    %7 = vector.broadcast %5 : vector<128x1xf32> to vector<128x128xf32>
    %8 = vector.broadcast %2 : vector<1x128xf32> to vector<128x128xf32>
    %9 = arith.addf %7, %8 : vector<128x128xf32>
    %cst_6 = arith.constant 2.000000e+00 : f32
    %10 = vector.broadcast %cst_6 : f32 to vector<128x128xf32>
    %11 = arith.mulf %10, %6 : vector<128x128xf32>
    %12 = arith.subf %9, %11 : vector<128x128xf32>
    %c0_7 = arith.constant 0 : index
    %c0_8 = arith.constant 0 : index
    %13 = vector.load %arg9[%c0_7, %c0_8] : memref<128x128xf32, #tpu.memory_space<vmem>>, vector<128x128xf32>
    tpu.vector_store %arg9[%c0_7, %c0_8], %12 {strides = array<i32>} : memref<128x128xf32, #tpu.memory_space<vmem>>, vector<128x128xf32>,
    %cst_9 = arith.constant dense<0x7F800000> : vector<128xf32>
    %14 = vector.multi_reduction <minimumf>, %12, %cst_9 [1] : vector<128x128xf32> to vector<128xf32>
    %15 = vector.shape_cast %14 : vector<128xf32> to vector<128x1xf32>
    %16 = tpu.iota {dimensions = array<i32: 1>} : vector<128x128xi32>
    %17 = vector.broadcast %15 : vector<128x1xf32> to vector<128x128xf32>
    %18 = arith.cmpf oeq, %12, %17 : vector<128x128xf32>
    %c128_i32 = arith.constant 128 : i32
    %19 = vector.broadcast %c128_i32 : i32 to vector<128x128xi32>
    %20 = arith.select %18, %16, %19 : vector<128x128xi1>, vector<128x128xi32>
    %cst_10 = arith.constant dense<2147483647> : vector<128xi32>
    %21 = vector.multi_reduction <minsi>, %20, %cst_10 [1] : vector<128x128xi32> to vector<128xi32>
    %22 = vector.shape_cast %21 : vector<128xi32> to vector<1x1x128xi32>
    %c0_11 = arith.constant 0 : index
    %c0_12 = arith.constant 0 : index
    %c0_13 = arith.constant 0 : index
    %23 = vector.load %arg5[%c0_11, %c0_12, %c0_13] : memref<1x1x128xi32, #tpu.memory_space<vmem>>, vector<1x1x128xi32>
    tpu.vector_store %arg5[%c0_11, %c0_12, %c0_13], %22 {strides = array<i32>} : memref<1x1x128xi32, #tpu.memory_space<vmem>>, vector<1x1x128xi32>,
    %24 = vector.shape_cast %21 : vector<128xi32> to vector<128x1xi32>
    %25 = vector.broadcast %24 : vector<128x1xi32> to vector<128x128xi32>
    %26 = arith.cmpi eq, %16, %25 : vector<128x128xi32>
    %27 = arith.extui %26 : vector<128x128xi1> to vector<128x128xi32>
    %28 = arith.sitofp %27 : vector<128x128xi32> to vector<128x128xf32>
    %cst_14 = arith.constant dense<0.000000e+00> : vector<128x32xf32>
    %29 = tpu.matmul %28, %1, %cst_14 {dimension_numbers = #tpu.dot_dimension_numbers<[1], [0], [0], [1], [0, 0, 1, 1], [], []>} : vector<128x128xf32>, vector<128x32xf32>, vector<128x32xf32> -> vector<128x32xf32>
    %c0_15 = arith.constant 0 : index
    %c0_16 = arith.constant 0 : index
    %30 = vector.load %arg6[%c0_15, %c0_16] : memref<128x32xf32, #tpu.memory_space<vmem>>, vector<128x32xf32>
    tpu.vector_store %arg6[%c0_15, %c0_16], %29 {strides = array<i32>} : memref<128x32xf32, #tpu.memory_space<vmem>>, vector<128x32xf32>,
    %c1_i32 = arith.constant 1 : i32
    %31 = arith.muli %arg0, %c1_i32 : i32
    %32 = arith.addi %31, %arg1 : i32
    %c128_i32_17 = arith.constant 128 : i32
    %33 = arith.muli %32, %c128_i32_17 : i32
    %34 = tpu.iota {dimensions = array<i32: 0>} : vector<128x1xi32>
    %35 = vector.broadcast %33 : i32 to vector<128x1xi32>
    %36 = arith.addi %35, %34 : vector<128x1xi32>
    %c128_i32_18 = arith.constant 128 : i32
    %37 = vector.broadcast %c128_i32_18 : i32 to vector<128x1xi32>
    %38 = arith.cmpi slt, %36, %37 : vector<128x1xi32>
    %39 = arith.extui %38 : vector<128x1xi1> to vector<128x1xi32>
    %40 = arith.sitofp %39 : vector<128x1xi32> to vector<128x1xf32>
    %41 = arith.subf %29, %0 : vector<128x32xf32>
    %42 = arith.mulf %41, %41 : vector<128x32xf32>
    %43 = vector.broadcast %40 : vector<128x1xf32> to vector<128x32xf32>
    %44 = arith.mulf %42, %43 : vector<128x32xf32>
    %45 = vector.shape_cast %44 : vector<128x32xf32> to vector<1x128x32xf32>
    %cst_19 = arith.constant dense<0.000000e+00> : vector<1xf32>
    %46 = vector.multi_reduction <add>, %45, %cst_19 [1, 2] : vector<1x128x32xf32> to vector<1xf32>
    %47 = vector.shape_cast %46 : vector<1xf32> to vector<1x1x1xf32>
    %48 = vector.extract %47[0, 0, 0] : f32 from vector<1x1x1xf32>
    %49 = vector.broadcast %40 : vector<128x1xf32> to vector<128x128xf32>
    %50 = arith.mulf %28, %49 : vector<128x128xf32>
    %cst_20 = arith.constant dense<0.000000e+00> : vector<128xf32>
    %51 = vector.multi_reduction <add>, %50, %cst_20 [0] : vector<128x128xf32> to vector<128xf32>
    %52 = vector.shape_cast %51 : vector<128xf32> to vector<1x128xf32>
    %c0_i32 = arith.constant 0 : i32
    %53 = arith.cmpi eq, %arg1, %c0_i32 : i32
    %54 = arith.extui %53 : i1 to i32
    %c0_i32_21 = arith.constant 0 : i32
    %55 = arith.cmpi ne, %54, %c0_i32_21 : i32
    scf.if %55 {
      %cst_34 = arith.constant 0.000000e+00 : f32
      %64 = vector.broadcast %cst_34 : f32 to vector<1x1x1xf32>
      %c0_35 = arith.constant 0 : index
      %c0_36 = arith.constant 0 : index
      %c0_37 = arith.constant 0 : index
      %65 = vector.load %arg7[%c0_35, %c0_36, %c0_37] : memref<1x1x1xf32, #tpu.memory_space<vmem>>, vector<1x1x1xf32>
      tpu.vector_store %arg7[%c0_35, %c0_36, %c0_37], %64 {strides = array<i32>} : memref<1x1x1xf32, #tpu.memory_space<vmem>>, vector<1x1x1xf32>,
      %cst_38 = arith.constant 0.000000e+00 : f32
      %66 = vector.broadcast %cst_38 : f32 to vector<1x1x128xf32>
      %c0_39 = arith.constant 0 : index
      %c0_40 = arith.constant 0 : index
      %c0_41 = arith.constant 0 : index
      %67 = vector.load %arg8[%c0_39, %c0_40, %c0_41] : memref<1x1x128xf32, #tpu.memory_space<vmem>>, vector<1x1x128xf32>
      tpu.vector_store %arg8[%c0_39, %c0_40, %c0_41], %66 {strides = array<i32>} : memref<1x1x128xf32, #tpu.memory_space<vmem>>, vector<1x1x128xf32>,
    } else {
    }
    %c0_22 = arith.constant 0 : index
    %c0_23 = arith.constant 0 : index
    %c0_24 = arith.constant 0 : index
    %56 = vector.load %arg7[%c0_22, %c0_23, %c0_24] : memref<1x1x1xf32, #tpu.memory_space<vmem>>, vector<1x1x1xf32>
    %57 = vector.broadcast %48 : f32 to vector<1x1x1xf32>
    %58 = arith.addf %56, %57 : vector<1x1x1xf32>
    %c0_25 = arith.constant 0 : index
    %c0_26 = arith.constant 0 : index
    %c0_27 = arith.constant 0 : index
    %59 = vector.load %arg7[%c0_25, %c0_26, %c0_27] : memref<1x1x1xf32, #tpu.memory_space<vmem>>, vector<1x1x1xf32>
    tpu.vector_store %arg7[%c0_25, %c0_26, %c0_27], %58 {strides = array<i32>} : memref<1x1x1xf32, #tpu.memory_space<vmem>>, vector<1x1x1xf32>,
    %c0_28 = arith.constant 0 : index
    %c0_29 = arith.constant 0 : index
    %c0_30 = arith.constant 0 : index
    %60 = vector.load %arg8[%c0_28, %c0_29, %c0_30] : memref<1x1x128xf32, #tpu.memory_space<vmem>>, vector<1x1x128xf32>
    %61 = vector.shape_cast %52 : vector<1x128xf32> to vector<1x1x128xf32>
    %62 = arith.addf %60, %61 : vector<1x1x128xf32>
    %c0_31 = arith.constant 0 : index
    %c0_32 = arith.constant 0 : index
    %c0_33 = arith.constant 0 : index
    %63 = vector.load %arg8[%c0_31, %c0_32, %c0_33] : memref<1x1x128xf32, #tpu.memory_space<vmem>>, vector<1x1x128xf32>
    tpu.vector_store %arg8[%c0_31, %c0_32, %c0_33], %62 {strides = array<i32>} : memref<1x1x128xf32, #tpu.memory_space<vmem>>, vector<1x1x128xf32>,
    return
  }
  func.func @transform_0(%arg0: i32, %arg1: i32) -> (i32, i32) {
    %c1_i32 = arith.constant 1 : i32
    %0 = arith.muli %arg0, %c1_i32 : i32
    %1 = arith.addi %0, %arg1 : i32
    %c0_i32 = arith.constant 0 : i32
    %c0_i32_0 = arith.constant 0 : i32
    return %1, %c0_i32 : i32, i32
  }
  func.func @transform_1(%arg0: i32, %arg1: i32) -> (i32, i32) {
    %c0_i32 = arith.constant 0 : i32
    %c0_i32_0 = arith.constant 0 : i32
    %c0_i32_1 = arith.constant 0 : i32
    return %c0_i32, %c0_i32_0 : i32, i32
  }
  func.func @transform_2(%arg0: i32, %arg1: i32) -> (i32, i32) {
    %c0_i32 = arith.constant 0 : i32
    %c0_i32_0 = arith.constant 0 : i32
    %c0_i32_1 = arith.constant 0 : i32
    return %c0_i32, %c0_i32_0 : i32, i32
  }
  func.func @transform_3(%arg0: i32, %arg1: i32) -> (i32, i32, i32) {
    %c1_i32 = arith.constant 1 : i32
    %0 = arith.muli %arg0, %c1_i32 : i32
    %1 = arith.addi %0, %arg1 : i32
    %c0_i32 = arith.constant 0 : i32
    %c0_i32_0 = arith.constant 0 : i32
    %c0_i32_1 = arith.constant 0 : i32
    return %1, %c0_i32, %c0_i32_0 : i32, i32, i32
  }
  func.func @transform_4(%arg0: i32, %arg1: i32) -> (i32, i32) {
    %c1_i32 = arith.constant 1 : i32
    %0 = arith.muli %arg0, %c1_i32 : i32
    %1 = arith.addi %0, %arg1 : i32
    %c0_i32 = arith.constant 0 : i32
    %c0_i32_0 = arith.constant 0 : i32
    return %1, %c0_i32 : i32, i32
  }
  func.func @transform_5(%arg0: i32, %arg1: i32) -> (i32, i32, i32) {
    %c0_i32 = arith.constant 0 : i32
    %c0_i32_0 = arith.constant 0 : i32
    %c0_i32_1 = arith.constant 0 : i32
    return %arg0, %c0_i32, %c0_i32_0 : i32, i32, i32
  }
  func.func @transform_6(%arg0: i32, %arg1: i32) -> (i32, i32, i32) {
    %c0_i32 = arith.constant 0 : i32
    %c0_i32_0 = arith.constant 0 : i32
    %c0_i32_1 = arith.constant 0 : i32
    return %arg0, %c0_i32, %c0_i32_0 : i32, i32, i32
  }
  func.func @transform_7(%arg0: i32, %arg1: i32) -> (i32, i32) {
    %c1_i32 = arith.constant 1 : i32
    %0 = arith.muli %arg0, %c1_i32 : i32
    %1 = arith.addi %0, %arg1 : i32
    %c0_i32 = arith.constant 0 : i32
    %c0_i32_0 = arith.constant 0 : i32
    return %1, %c0_i32 : i32, i32
  }
}

</mosaic_0001>

<bundles_post_ra>
// kernel: vector_quantizer_ema_forward.1
= control target key start
LH: loop header
LB: loop body
LE: loop exit
PB: predicated region body
PF: predicated region fallthrough
CT: control target
= control target key end

     0   :  { %vm128_vm0 = vcmask 261120   ;;  %s2692_s0 = inlined_call_operand.vmem [shape: f32[128,32], index: 0, kind: input, shape index: {}]   ;;  %s2693_s1 = inlined_call_operand.vmem [shape: f32[128,32], index: 1, kind: input, shape index: {}]   ;;  %s2694_s2 = inlined_call_operand.vmem [shape: f32[1,128], index: 2, kind: input, shape index: {}]   ;;  %s2695_s3 = inlined_call_operand.vmem [shape: s32[1,1,128], index: 3, kind: output, shape index: {0}]   ;;  %s2696_s4 = inlined_call_operand.vmem [shape: f32[128,32], index: 4, kind: output, shape index: {1}]   ;;  %s2697_s5 = inlined_call_operand.hbm [shape: f32[1,1,1], index: 5, kind: output, shape index: {2}]   ;;  %s2698_s6 = inlined_call_operand.vmem [shape: f32[1,1,128], index: 6, kind: output, shape index: {3}]   ;;  %s2699_s7 = inlined_call_operand.vmem [shape: f32[128,128], index: 7, kind: output, shape index: {4}]  }
   0x1   :  { %v110_v0 = vld [vmem:[%s2693_s1 + $0x78] sm:$0xff]  ;;  %v109_v1 = vld [vmem:[%s2693_s1 + $0x70] sm:$0xff]  ;;  %v108_v2 = vld [vmem:[%s2693_s1 + $0x68] sm:$0xff] }
   0x2   :  { %1543 = vmatprep.subr.msk.mxu0 %vm128_vm0, %v110_v0  ;;  %1599 = vmatprep.subr.mxu1 %v110_v0  ;;  %v79_v3 = vld [vmem:[%s2692_s0] sm:$0xff]  ;;  %v1759_v4 = vld [vmem:[%s2692_s0 + $0x8] sm:$0xff]  ;;  %v1766_v5 = vld [vmem:[%s2692_s0 + $0x10] sm:$0xff] }
   0x3   :  { %1544 = vmatpush3.xpose.msk.msra.mxu0 %vm128_vm0, %v110_v0  ;;  %1600 = vmatpush3.msra.mxu1 %v110_v0  ;;  %v1771_v6 = vld [vmem:[%s2692_s0 + $0x18] sm:$0xff]  ;;  %v112_v7 = vmul.f32 %v79_v3, %v79_v3  ;;  %v113_v8 = vmul.f32 %v1759_v4, %v1759_v4  ;;  %v107_v9 = vld [vmem:[%s2693_s1 + $0x60] sm:$0xff]  ;;  %v114_v10 = vmul.f32 %v1766_v5, %v1766_v5  ;;  %v1797_v16 = vld [vmem:[%s2692_s0 + $0x28] sm:$0xff] }
   0x4   :  { %1545 = vmatprep.subr.msk.mxu0 %vm128_vm0, %v109_v1  ;;  %1601 = vmatprep.subr.mxu1 %v109_v1  ;;  %v115_v11 = vmul.f32 %v1771_v6, %v1771_v6  ;;  %v1787_v13 = vld [vmem:[%s2692_s0 + $0x20] sm:$0xff]  ;;  %v106_v15 = vld [vmem:[%s2693_s1 + $0x58] sm:$0xff]  ;;  %v117_v20 = vmul.f32 %v1797_v16, %v1797_v16 }
   0x5   :  { %1602 = vmatpush3.msra.mxu1 %v109_v1  ;;  %1575 = vmatprep.mubr.msk.f32.mxu0 %vm128_vm0, %v79_v3  ;;  %v129_v12 = vsel %vm128_vm0, %v112_v7, 0.0  ;;  %v135_v14 = vsel %vm128_vm0, %v114_v10, 0.0  ;;  %v132_v17 = vsel %vm128_vm0, %v113_v8, 0.0  ;;  %v116_v18 = vmul.f32 %v1787_v13, %v1787_v13 }
   0x6   :  { %1603 = vmatprep.subr.mxu1 %v108_v2  ;;  %130 = vadd.xlane.f32.xlu0 %v129_v12  ;;  %v138_v19 = vsel %vm128_vm0, %v115_v11, 0.0 }
   0x7   :  { %1546 = vmatpush3.xpose.msk.msra.mxu0 %vm128_vm0, %v109_v1  ;;  %1604 = vmatpush3.msra.mxu1 %v108_v2 }
   0x8   :  { %1547 = vmatprep.subr.msk.mxu0 %vm128_vm0, %v108_v2  ;;  %1605 = vmatprep.subr.mxu1 %v107_v9 }
   0x9   :  { %1606 = vmatpush3.msra.mxu1 %v107_v9  ;;  %136 = vadd.xlane.f32.xlu1 %v135_v14 }
   0xa   :  { %1607 = vmatprep.subr.mxu1 %v106_v15 }
   0xb   :  { %1548 = vmatpush3.xpose.msk.msra.mxu0 %vm128_vm0, %v108_v2 }
   0xc   :  { %1549 = vmatprep.subr.msk.mxu0 %vm128_vm0, %v107_v9 }
   0xd   :  { %13 = vsyncpa [#allocation3], 0  ;;  %v105_v21 = vld [vmem:[%s2693_s1 + $0x50] sm:$0xff]  ;;  %1608 = vmatpush3.msra.mxu1 %v106_v15  ;;  %133 = vadd.xlane.f32.xlu0 %v132_v17  ;;  %v1818_v23 = vld [vmem:[%s2692_s0 + $0x38] sm:$0xff]  ;;  %v141_v24 = vsel %vm128_vm0, %v116_v18, 0.0  ;;  %v144_v27 = vsel %vm128_vm0, %v117_v20, 0.0 }
   0xe   :  { %v1812_v22 = vld [vmem:[%s2692_s0 + $0x30] sm:$0xff]  ;;  %1609 = vmatprep.subr.mxu1 %v105_v21  ;;  %139 = vadd.xlane.f32.xlu1 %v138_v19  ;;  %v104_v26 = vld [vmem:[%s2693_s1 + $0x48] sm:$0xff]  ;;  %v119_v28 = vmul.f32 %v1818_v23, %v1818_v23  ;;  %v1833_v29 = vld [vmem:[%s2692_s0 + $0x40] sm:$0xff] }
   0xf   :  { %1550 = vmatpush3.xpose.msk.msra.mxu0 %vm128_vm0, %v107_v9  ;;  %v118_v25 = vmul.f32 %v1812_v22, %v1812_v22  ;;  %1610 = vmatpush3.msra.mxu1 %v105_v21  ;;  %v103_v30 = vld [vmem:[%s2693_s1 + $0x40] sm:$0xff]  ;;  %v1842_v31 = vld [vmem:[%s2692_s0 + $0x48] sm:$0xff]  ;;  %v120_v33 = vmul.f32 %v1833_v29, %v1833_v29  ;;  %v102_v36 = vld [vmem:[%s2693_s1 + $0x38] sm:$0xff] }
  0x10   :  { %1551 = vmatprep.subr.msk.mxu0 %vm128_vm0, %v106_v15  ;;  %1611 = vmatprep.subr.mxu1 %v104_v26  ;;  %v150_v34 = vsel %vm128_vm0, %v119_v28, 0.0  ;;  %v121_v35 = vmul.f32 %v1842_v31, %v1842_v31  ;;  %v1857_v37 = vld [vmem:[%s2692_s0 + $0x50] sm:$0xff]  ;;  %v1863_v38 = vld [vmem:[%s2692_s0 + $0x58] sm:$0xff]  ;;  %v1878_v44 = vld [vmem:[%s2692_s0 + $0x60] sm:$0xff] }
  0x11   :  { %142 = vadd.xlane.f32.xlu0 %v141_v24  ;;  %1612 = vmatpush3.msra.mxu1 %v104_v26  ;;  %v147_v32 = vsel %vm128_vm0, %v118_v25, 0.0  ;;  %v153_v39 = vsel %vm128_vm0, %v120_v33, 0.0  ;;  %v122_v40 = vmul.f32 %v1857_v37, %v1857_v37  ;;  %v101_v41 = vld [vmem:[%s2693_s1 + $0x30] sm:$0xff]  ;;  %v123_v43 = vmul.f32 %v1863_v38, %v1863_v38  ;;  %v100_v45 = vld [vmem:[%s2693_s1 + $0x28] sm:$0xff]  ;;  %v99_v51 = vld [vmem:[%s2693_s1 + $0x20] sm:$0xff] }
  0x12   :  { %145 = vadd.xlane.f32.xlu1 %v144_v27  ;;  %1613 = vmatprep.subr.mxu1 %v103_v30  ;;  %v156_v42 = vsel %vm128_vm0, %v121_v35, 0.0  ;;  %v1887_v46 = vld [vmem:[%s2692_s0 + $0x68] sm:$0xff]  ;;  %v124_v48 = vmul.f32 %v1878_v44, %v1878_v44  ;;  %v93_v52 = vld [vmem:[%s2692_s0 + $0x70] sm:$0xff]  ;;  %v94_v53 = vld [vmem:[%s2692_s0 + $0x78] sm:$0xff] }
  0x13   :  { %1552 = vmatpush3.xpose.msk.msra.mxu0 %vm128_vm0, %v106_v15  ;;  %1614 = vmatpush3.msra.mxu1 %v103_v30  ;;  %v159_v47 = vsel %vm128_vm0, %v122_v40, 0.0  ;;  %v162_v49 = vsel %vm128_vm0, %v123_v43, 0.0  ;;  %v125_v50 = vmul.f32 %v1887_v46, %v1887_v46  ;;  %v126_v55 = vmul.f32 %v93_v52, %v93_v52  ;;  %v98_v56 = vld [vmem:[%s2693_s1 + $0x18] sm:$0xff]  ;;  %v97_v59 = vld [vmem:[%s2693_s1 + $0x10] sm:$0xff]  ;;  %v96_v62 = vld [vmem:[%s2693_s1 + $0x8] sm:$0xff] }
  0x14   :  { %1553 = vmatprep.subr.msk.mxu0 %vm128_vm0, %v105_v21  ;;  %1615 = vmatprep.subr.mxu1 %v102_v36  ;;  %v165_v54 = vsel %vm128_vm0, %v124_v48, 0.0  ;;  %v127_v58 = vmul.f32 %v94_v53, %v94_v53  ;;  %v95_v63 = vld [vmem:[%s2693_s1] sm:$0xff] }
  0x15   :  { %148 = vadd.xlane.f32.xlu0 %v147_v32  ;;  %1616 = vmatpush3.msra.mxu1 %v102_v36  ;;  %v168_v57 = vsel %vm128_vm0, %v125_v50, 0.0  ;;  %v171_v60 = vsel %vm128_vm0, %v126_v55, 0.0 }
  0x16   :  { %151 = vadd.xlane.f32.xlu1 %v150_v34  ;;  %1617 = vmatprep.subr.mxu1 %v101_v41  ;;  %v174_v61 = vsel %vm128_vm0, %v127_v58, 0.0 }
  0x17   :  { %1554 = vmatpush3.xpose.msk.msra.mxu0 %vm128_vm0, %v105_v21  ;;  %1618 = vmatpush3.msra.mxu1 %v101_v41 }
  0x18   :  { %1555 = vmatprep.subr.msk.mxu0 %vm128_vm0, %v104_v26  ;;  %1619 = vmatprep.subr.mxu1 %v100_v45 }
  0x19   :  { %154 = vadd.xlane.f32.xlu0 %v153_v39  ;;  %1620 = vmatpush3.msra.mxu1 %v100_v45 }
  0x1a   :  { %157 = vadd.xlane.f32.xlu1 %v156_v42  ;;  %1621 = vmatprep.subr.mxu1 %v99_v51 }
  0x1b   :  { %1556 = vmatpush3.xpose.msk.msra.mxu0 %vm128_vm0, %v104_v26  ;;  %1622 = vmatpush3.msra.mxu1 %v99_v51 }
  0x1c   :  { %1557 = vmatprep.subr.msk.mxu0 %vm128_vm0, %v103_v30  ;;  %1623 = vmatprep.subr.mxu1 %v98_v56 }
  0x1d   :  { %160 = vadd.xlane.f32.xlu0 %v159_v47  ;;  %1624 = vmatpush3.msra.mxu1 %v98_v56 }
  0x1e   :  { %163 = vadd.xlane.f32.xlu1 %v162_v49  ;;  %1625 = vmatprep.subr.mxu1 %v97_v59 }
  0x1f   :  { %1558 = vmatpush3.xpose.msk.msra.mxu0 %vm128_vm0, %v103_v30  ;;  %1626 = vmatpush3.msra.mxu1 %v97_v59 }
  0x20   :  { %1559 = vmatprep.subr.msk.mxu0 %vm128_vm0, %v102_v36  ;;  %1627 = vmatprep.subr.mxu1 %v96_v62 }
  0x21   :  { %166 = vadd.xlane.f32.xlu0 %v165_v54  ;;  %1628 = vmatpush3.msra.mxu1 %v96_v62 }
  0x22   :  { %169 = vadd.xlane.f32.xlu1 %v168_v57  ;;  %1629 = vmatprep.subr.mxu1 %v95_v63 }
  0x23   :  { %1560 = vmatpush3.xpose.msk.msra.mxu0 %vm128_vm0, %v102_v36  ;;  %1630 = vmatpush3.msra.mxu1 %v95_v63 }
  0x24   :  { %1561 = vmatprep.subr.msk.mxu0 %vm128_vm0, %v101_v41 }
  0x25   :  { %172 = vadd.xlane.f32.xlu0 %v171_v60 }
  0x26   :  { %175 = vadd.xlane.f32.xlu1 %v174_v61 }
  0x27   :  { %1562 = vmatpush3.xpose.msk.msra.mxu0 %vm128_vm0, %v101_v41 }
  0x28   :  { %1563 = vmatprep.subr.msk.mxu0 %vm128_vm0, %v100_v45 }
  0x2b   :  { %1564 = vmatpush3.xpose.msk.msra.mxu0 %vm128_vm0, %v100_v45 }
  0x2c   :  { %1565 = vmatprep.subr.msk.mxu0 %vm128_vm0, %v99_v51 }
  0x2f   :  { %1566 = vmatpush3.xpose.msk.msra.mxu0 %vm128_vm0, %v99_v51 }
  0x30   :  { %1567 = vmatprep.subr.msk.mxu0 %vm128_vm0, %v98_v56 }
  0x33   :  { %1568 = vmatpush3.xpose.msk.msra.mxu0 %vm128_vm0, %v98_v56 }
  0x34   :  { %1569 = vmatprep.subr.msk.mxu0 %vm128_vm0, %v97_v59 }
  0x37   :  { %1570 = vmatpush3.xpose.msk.msra.mxu0 %vm128_vm0, %v97_v59 }
  0x38   :  { %1571 = vmatprep.subr.msk.mxu0 %vm128_vm0, %v96_v62 }
  0x3b   :  { %1572 = vmatpush3.xpose.msk.msra.mxu0 %vm128_vm0, %v96_v62 }
  0x3c   :  { %1573 = vmatprep.subr.msk.mxu0 %vm128_vm0, %v95_v63 }
  0x3f   :  { %1574 = vmatpush3.xpose.msk.msra.mxu0 %vm128_vm0, %v95_v63 }
  0x42   :  { %1576 = vmatmul.mubr.msk.f32.vlgmr.msra.gmra.mxu0 %vm128_vm0, %v1759_v4 }
  0x43   :  { %1578 = vmatprep.mubr.msk.f32.mxu0 %vm128_vm0, %v1766_v5  ;;  %v1969_v5 = vld [vmem:[%s2694_s2] ss:$0 sm:$0xff] }
  0x46   :  { %1579 = vmatmul.mubr.msk.f32.gmra.mxu0 %vm128_vm0, %v1771_v6 }
  0x47   :  { %1581 = vmatprep.mubr.msk.f32.mxu0 %vm128_vm0, %v1787_v13 }
  0x4a   :  { %1582 = vmatmul.mubr.msk.f32.gmra.mxu0 %vm128_vm0, %v1797_v16 }
  0x4b   :  { %1584 = vmatprep.mubr.msk.f32.mxu0 %vm128_vm0, %v1812_v22 }
  0x4e   :  { %1585 = vmatmul.mubr.msk.f32.gmra.mxu0 %vm128_vm0, %v1818_v23 }
  0x4f   :  { %1587 = vmatprep.mubr.msk.f32.mxu0 %vm128_vm0, %v1833_v29 }
  0x52   :  { %1588 = vmatmul.mubr.msk.f32.gmra.mxu0 %vm128_vm0, %v1842_v31 }
  0x53   :  { %1590 = vmatprep.mubr.msk.f32.mxu0 %vm128_vm0, %v1857_v37 }
  0x56   :  { %1591 = vmatmul.mubr.msk.f32.gmra.mxu0 %vm128_vm0, %v1863_v38 }
  0x57   :  { %1593 = vmatprep.mubr.msk.f32.mxu0 %vm128_vm0, %v1878_v44 }
  0x5a   :  { %1594 = vmatmul.mubr.msk.f32.gmra.mxu0 %vm128_vm0, %v1887_v46 }
  0x5b   :  { %1596 = vmatprep.mubr.msk.f32.mxu0 %vm128_vm0, %v93_v52 }
  0x5e   :  { %1597 = vmatmul.mubr.msk.f32.gmra.mxu0 %vm128_vm0, %v94_v53 }
  0x8f   :  { %v131_v1 = vpop.xlane.xlu0 %130 }
  0x90   :  { %v424_v13 = vadd.f32 %v1969_v5, %v131_v1 }
  0x92   :  { %v137_v0 = vpop.xlane.xlu1 %136 }
  0x93   :  { %v426_v22 = vadd.f32 %v1969_v5, %v137_v0 }
  0x96   :  { %v134_v3 = vpop.xlane.xlu0 %133 }
  0x97   :  { %v140_v2 = vpop.xlane.xlu1 %139  ;;  %v425_v7 = vadd.f32 %v1969_v5, %v134_v3 }
  0x98   :  { %v427_v16 = vadd.f32 %v1969_v5, %v140_v2 }
  0x9a   :  { %v143_v6 = vpop.xlane.xlu0 %142 }
  0x9b   :  { %v146_v4 = vpop.xlane.xlu1 %145  ;;  %v428_v30 = vadd.f32 %v1969_v5, %v143_v6 }
  0x9c   :  { %v429_v25 = vadd.f32 %v1969_v5, %v146_v4 }
  0x9e   :  { %v149_v12 = vpop.xlane.xlu0 %148 }
  0x9f   :  { %v152_v9 = vpop.xlane.xlu1 %151  ;;  %v430_v39 = vadd.f32 %v1969_v5, %v149_v12 }
  0xa0   :  { %v431_v34 = vadd.f32 %v1969_v5, %v152_v9 }
  0xa2   :  { %v155_v27 = vpop.xlane.xlu0 %154 }
  0xa3   :  { %v158_v21 = vpop.xlane.xlu1 %157  ;;  %v432_v48 = vadd.f32 %v1969_v5, %v155_v27 }
  0xa4   :  { %v433_v44 = vadd.f32 %v1969_v5, %v158_v21 }
  0xa6   :  { %v161_v41 = vpop.xlane.xlu0 %160 }
  0xa7   :  { %v164_v36 = vpop.xlane.xlu1 %163  ;;  %v434_v58 = vadd.f32 %v1969_v5, %v161_v41 }
  0xa8   :  { %v435_v53 = vadd.f32 %v1969_v5, %v164_v36 }
  0xaa   :  { %v167_v55 = vpop.xlane.xlu0 %166 }
  0xab   :  { %v170_v50 = vpop.xlane.xlu1 %169  ;;  %v436_v3 = vadd.f32 %v1969_v5, %v167_v55 }
  0xac   :  { %v437_v62 = vadd.f32 %v1969_v5, %v170_v50 }
  0xae   :  { %v173_v6 = vpop.xlane.xlu0 %172 }
  0xaf   :  { %v176_v0 = vpop.xlane.xlu1 %175 }
  0xb0   :  { %v439_v9 = vadd.f32 %v1969_v5, %v176_v0 }
 0x102   :  { %v1577_v8 = vpop.f32.mrf.mxu0 }
 0x103   :  { %v441_v10 = vmul.f32 2.0, %v1577_v8 }
 0x104   :  { %v339_v11 = vpop.f32.mrf.mxu0 }
 0x105   :  { %v1973_v14 = vsub.f32 %v425_v7, %v441_v10  ;;  %v440_v15 = vmul.f32 2.0, %v339_v11 }
 0x106   :  { %v1580_v17 = vpop.f32.mrf.mxu0 }
 0x107   :  { %473 = vst [vmem:[%s2699_s7 + $0x8] sm:$0xff] %v1973_v14  ;;  %v1980_v18 = vsub.f32 %v424_v13, %v440_v15  ;;  %v443_v19 = vmul.f32 2.0, %v1580_v17  ;;  %490 = vmin.xlane.f32.xlu1 %v1973_v14  ;;  %v438_v13 = vadd.f32 %v1969_v5, %v173_v6  ;;  %v520_v5 = vlaneseq }
 0x108   :  { %v349_v20 = vpop.f32.mrf.mxu0 }
 0x109   :  { %472 = vst [vmem:[%s2699_s7] sm:$0xff] %v1980_v18  ;;  %v1988_v23 = vsub.f32 %v427_v16, %v443_v19  ;;  %v442_v24 = vmul.f32 2.0, %v349_v20  ;;  %488 = vmin.xlane.f32.xlu0 %v1980_v18  ;;  %v2100_v20 = vand.u32 127, %v520_v5 }
 0x10a   :  { %v1583_v26 = vpop.f32.mrf.mxu0 }
 0x10b   :  { %475 = vst [vmem:[%s2699_s7 + $0x18] sm:$0xff] %v1988_v23  ;;  %v1996_v28 = vsub.f32 %v426_v22, %v442_v24  ;;  %v445_v29 = vmul.f32 2.0, %v1583_v26  ;;  %494 = vmin.xlane.f32.xlu1 %v1988_v23 }
 0x10c   :  { %v359_v31 = vpop.f32.mrf.mxu0 }
 0x10d   :  { %474 = vst [vmem:[%s2699_s7 + $0x10] sm:$0xff] %v1996_v28  ;;  %v2004_v32 = vsub.f32 %v429_v25, %v445_v29  ;;  %v444_v33 = vmul.f32 2.0, %v359_v31  ;;  %492 = vmin.xlane.f32.xlu0 %v1996_v28 }
 0x10e   :  { %v1586_v35 = vpop.f32.mrf.mxu0 }
 0x10f   :  { %477 = vst [vmem:[%s2699_s7 + $0x28] sm:$0xff] %v2004_v32  ;;  %v2012_v37 = vsub.f32 %v428_v30, %v444_v33  ;;  %v447_v38 = vmul.f32 2.0, %v1586_v35  ;;  %498 = vmin.xlane.f32.xlu1 %v2004_v32 }
 0x110   :  { %v369_v40 = vpop.f32.mrf.mxu0 }
 0x111   :  { %476 = vst [vmem:[%s2699_s7 + $0x20] sm:$0xff] %v2012_v37  ;;  %v2020_v42 = vsub.f32 %v431_v34, %v447_v38  ;;  %v446_v43 = vmul.f32 2.0, %v369_v40  ;;  %496 = vmin.xlane.f32.xlu0 %v2012_v37 }
 0x112   :  { %v1589_v45 = vpop.f32.mrf.mxu0 }
 0x113   :  { %479 = vst [vmem:[%s2699_s7 + $0x38] sm:$0xff] %v2020_v42  ;;  %v2028_v46 = vsub.f32 %v430_v39, %v446_v43  ;;  %v449_v47 = vmul.f32 2.0, %v1589_v45  ;;  %502 = vmin.xlane.f32.xlu1 %v2020_v42 }
 0x114   :  { %v379_v49 = vpop.f32.mrf.mxu0 }
 0x115   :  { %478 = vst [vmem:[%s2699_s7 + $0x30] sm:$0xff] %v2028_v46  ;;  %v2036_v51 = vsub.f32 %v433_v44, %v449_v47  ;;  %v448_v52 = vmul.f32 2.0, %v379_v49  ;;  %500 = vmin.xlane.f32.xlu0 %v2028_v46 }
 0x116   :  { %v1592_v54 = vpop.f32.mrf.mxu0 }
 0x117   :  { %481 = vst [vmem:[%s2699_s7 + $0x48] sm:$0xff] %v2036_v51  ;;  %v2044_v56 = vsub.f32 %v432_v48, %v448_v52  ;;  %v451_v57 = vmul.f32 2.0, %v1592_v54  ;;  %506 = vmin.xlane.f32.xlu1 %v2036_v51 }
 0x118   :  { %v389_v59 = vpop.f32.mrf.mxu0 }
 0x119   :  { %480 = vst [vmem:[%s2699_s7 + $0x40] sm:$0xff] %v2044_v56  ;;  %v2052_v60 = vsub.f32 %v435_v53, %v451_v57  ;;  %v450_v61 = vmul.f32 2.0, %v389_v59  ;;  %504 = vmin.xlane.f32.xlu0 %v2044_v56 }
 0x11a   :  { %v1595_v63 = vpop.f32.mrf.mxu0 }
 0x11b   :  { %483 = vst [vmem:[%s2699_s7 + $0x58] sm:$0xff] %v2052_v60  ;;  %v2060_v1 = vsub.f32 %v434_v58, %v450_v61  ;;  %v453_v2 = vmul.f32 2.0, %v1595_v63  ;;  %510 = vmin.xlane.f32.xlu1 %v2052_v60 }
 0x11c   :  { %v399_v4 = vpop.f32.mrf.mxu0 }
 0x11d   :  { %482 = vst [vmem:[%s2699_s7 + $0x50] sm:$0xff] %v2060_v1  ;;  %v2068_v7 = vsub.f32 %v437_v62, %v453_v2  ;;  %v452_v8 = vmul.f32 2.0, %v399_v4  ;;  %508 = vmin.xlane.f32.xlu0 %v2060_v1 }
 0x11e   :  { %v1598_v10 = vpop.f32.mrf.mxu0 }
 0x11f   :  { %485 = vst [vmem:[%s2699_s7 + $0x68] sm:$0xff] %v2068_v7  ;;  %v2076_v11 = vsub.f32 %v436_v3, %v452_v8  ;;  %v455_v12 = vmul.f32 2.0, %v1598_v10  ;;  %514 = vmin.xlane.f32.xlu1 %v2068_v7 }
 0x120   :  { %v409_v15 = vpop.f32.mrf.mxu0 }
 0x121   :  { %484 = vst [vmem:[%s2699_s7 + $0x60] sm:$0xff] %v2076_v11  ;;  %v2084_v16 = vsub.f32 %v439_v9, %v455_v12  ;;  %v454_v17 = vmul.f32 2.0, %v409_v15  ;;  %512 = vmin.xlane.f32.xlu0 %v2076_v11 }
 0x123   :  { %487 = vst [vmem:[%s2699_s7 + $0x78] sm:$0xff] %v2084_v16  ;;  %v2091_v19 = vsub.f32 %v438_v13, %v454_v17  ;;  %518 = vmin.xlane.f32.xlu1 %v2084_v16 }
 0x125   :  { %486 = vst [vmem:[%s2699_s7 + $0x70] sm:$0xff] %v2091_v19  ;;  %516 = vmin.xlane.f32.xlu0 %v2091_v19 }
 0x190   :  { %v491_v21 = vpop.xlane.xlu1 %490 }
 0x191   :  { %vm523_vm1 = vcmp.eq.f32.partialorder %v1973_v14, %v491_v21 }
 0x192   :  { %v2104_v22 = vsel %vm523_vm1, %v2100_v20, 128  ;;  %v489_v24 = vpop.xlane.xlu0 %488 }
 0x193   :  { %vm522_vm2 = vcmp.eq.f32.partialorder %v1980_v18, %v489_v24  ;;  %v569_v25 = vshra.s32 %v2104_v22, 16 }
 0x194   :  { %v2109_v26 = vsel %vm522_vm2, %v2100_v20, 128  ;;  %v495_v27 = vpop.xlane.xlu1 %494 }
 0x195   :  { %vm525_vm3 = vcmp.eq.f32.partialorder %v1988_v23, %v495_v27  ;;  %v2112_v29 = vcvt.s32.f32 %v569_v25  ;;  %v555_v30 = vshra.s32 %v2109_v26, 16  ;;  %v554_v27 = vand.u32 65535, %v2109_v26 }
 0x196   :  { %v2116_v14 = vsel %vm525_vm3, %v2100_v20, 128  ;;  %v493_v31 = vpop.xlane.xlu0 %492 }
 0x197   :  { %vm524_vm4 = vcmp.eq.f32.partialorder %v1996_v28, %v493_v31  ;;  %572 = vmin.xlane.f32.xlu1 %v2112_v29  ;;  %v2120_v18 = vcvt.s32.f32 %v555_v30  ;;  %v597_v33 = vshra.s32 %v2116_v14, 16  ;;  %v596_v30 = vand.u32 65535, %v2116_v14 }
 0x198   :  { %v2124_v34 = vsel %vm524_vm4, %v2100_v20, 128  ;;  %v499_v23 = vpop.xlane.xlu1 %498 }
 0x199   :  { %vm527_vm5 = vcmp.eq.f32.partialorder %v2004_v32, %v499_v23  ;;  %558 = vmin.xlane.f32.xlu0 %v2120_v18  ;;  %v2128_v35 = vcvt.s32.f32 %v597_v33  ;;  %v583_v36 = vshra.s32 %v2124_v34, 16  ;;  %v582_v23 = vand.u32 65535, %v2124_v34 }
 0x19a   :  { %v2132_v28 = vsel %vm527_vm5, %v2100_v20, 128  ;;  %v497_v38 = vpop.xlane.xlu0 %496 }
 0x19b   :  { %vm526_vm6 = vcmp.eq.f32.partialorder %v2012_v37, %v497_v38  ;;  %600 = vmin.xlane.f32.xlu1 %v2128_v35  ;;  %v2136_v39 = vcvt.s32.f32 %v583_v36  ;;  %v625_v40 = vshra.s32 %v2132_v28, 16 }
 0x19c   :  { %v2140_v32 = vsel %vm526_vm6, %v2100_v20, 128  ;;  %v503_v41 = vpop.xlane.xlu1 %502 }
 0x19d   :  { %vm529_vm7 = vcmp.eq.f32.partialorder %v2020_v42, %v503_v41  ;;  %586 = vmin.xlane.f32.xlu0 %v2136_v39  ;;  %v2144_v43 = vcvt.s32.f32 %v625_v40  ;;  %v611_v44 = vshra.s32 %v2140_v32, 16  ;;  %v556_v40 = vcvt.s32.f32 %v554_v27 }
 0x19e   :  { %v2148_v37 = vsel %vm529_vm7, %v2100_v20, 128  ;;  %v501_v45 = vpop.xlane.xlu0 %500  ;;  %v598_v41 = vcvt.s32.f32 %v596_v30 }
 0x19f   :  { %vm528_vm8 = vcmp.eq.f32.partialorder %v2028_v46, %v501_v45  ;;  %628 = vmin.xlane.f32.xlu1 %v2144_v43  ;;  %v2152_v47 = vcvt.s32.f32 %v611_v44  ;;  %v653_v48 = vshra.s32 %v2148_v37, 16  ;;  %v584_v45 = vcvt.s32.f32 %v582_v23 }
 0x1a0   :  { %v2156_v42 = vsel %vm528_vm8, %v2100_v20, 128  ;;  %v507_v49 = vpop.xlane.xlu1 %506 }
 0x1a1   :  { %vm531_vm9 = vcmp.eq.f32.partialorder %v2036_v51, %v507_v49  ;;  %614 = vmin.xlane.f32.xlu0 %v2152_v47  ;;  %v2160_v50 = vcvt.s32.f32 %v653_v48  ;;  %v639_v52 = vshra.s32 %v2156_v42, 16 }
 0x1a2   :  { %v2164_v46 = vsel %vm531_vm9, %v2100_v20, 128  ;;  %v505_v53 = vpop.xlane.xlu0 %504 }
 0x1a3   :  { %vm530_vm10 = vcmp.eq.f32.partialorder %v2044_v56, %v505_v53  ;;  %656 = vmin.xlane.f32.xlu1 %v2160_v50  ;;  %v2168_v54 = vcvt.s32.f32 %v639_v52  ;;  %v681_v55 = vshra.s32 %v2164_v46, 16 }
 0x1a4   :  { %v2172_v51 = vsel %vm530_vm10, %v2100_v20, 128  ;;  %v511_v57 = vpop.xlane.xlu1 %510 }
 0x1a5   :  { %vm533_vm11 = vcmp.eq.f32.partialorder %v2052_v60, %v511_v57  ;;  %642 = vmin.xlane.f32.xlu0 %v2168_v54  ;;  %v2176_v58 = vcvt.s32.f32 %v681_v55  ;;  %v667_v59 = vshra.s32 %v2172_v51, 16 }
 0x1a6   :  { %v2180_v56 = vsel %vm533_vm11, %v2100_v20, 128  ;;  %v509_v61 = vpop.xlane.xlu0 %508 }
 0x1a7   :  { %vm532_vm12 = vcmp.eq.f32.partialorder %v2060_v1, %v509_v61  ;;  %684 = vmin.xlane.f32.xlu1 %v2176_v58  ;;  %v2184_v62 = vcvt.s32.f32 %v667_v59  ;;  %v709_v63 = vshra.s32 %v2180_v56, 16 }
 0x1a8   :  { %v2188_v60 = vsel %vm532_vm12, %v2100_v20, 128  ;;  %v515_v0 = vpop.xlane.xlu1 %514 }
 0x1a9   :  { %vm535_vm13 = vcmp.eq.f32.partialorder %v2068_v7, %v515_v0  ;;  %670 = vmin.xlane.f32.xlu0 %v2184_v62  ;;  %v2192_v2 = vcvt.s32.f32 %v709_v63  ;;  %v695_v3 = vshra.s32 %v2188_v60, 16 }
 0x1aa   :  { %v2196_v1 = vsel %vm535_vm13, %v2100_v20, 128  ;;  %v513_v4 = vpop.xlane.xlu0 %512 }
 0x1ab   :  { %vm534_vm14 = vcmp.eq.f32.partialorder %v2076_v11, %v513_v4  ;;  %712 = vmin.xlane.f32.xlu1 %v2192_v2  ;;  %v2200_v6 = vcvt.s32.f32 %v695_v3  ;;  %v737_v8 = vshra.s32 %v2196_v1, 16 }
 0x1ac   :  { %v2204_v7 = vsel %vm534_vm14, %v2100_v20, 128  ;;  %v519_v9 = vpop.xlane.xlu1 %518 }
 0x1ad   :  { %vm537_vm15 = vcmp.eq.f32.partialorder %v2084_v16, %v519_v9  ;;  %698 = vmin.xlane.f32.xlu0 %v2200_v6  ;;  %v2208_v10 = vcvt.s32.f32 %v737_v8  ;;  %v723_v12 = vshra.s32 %v2204_v7, 16  ;;  %v722_v9 = vand.u32 65535, %v2204_v7 }
 0x1ae   :  { %v2212_v11 = vsel %vm537_vm15, %v2100_v20, 128  ;;  %v517_v13 = vpop.xlane.xlu0 %516 }
 0x1af   :  { %vm536_vm1 = vcmp.eq.f32.partialorder %v2091_v19, %v517_v13  ;;  %740 = vmin.xlane.f32.xlu1 %v2208_v10  ;;  %v2216_v15 = vcvt.s32.f32 %v723_v12  ;;  %v765_v17 = vshra.s32 %v2212_v11, 16  ;;  %v568_v19 = vand.u32 65535, %v2104_v22 }
 0x1b0   :  { %v2220_v16 = vsel %vm536_vm1, %v2100_v20, 128  ;;  %v624_v22 = vand.u32 65535, %v2132_v28  ;;  %v724_v30 = vcvt.s32.f32 %v722_v9 }
 0x1b1   :  { %726 = vmin.xlane.f32.xlu0 %v2216_v15  ;;  %v2223_v21 = vcvt.s32.f32 %v765_v17  ;;  %v751_v24 = vshra.s32 %v2220_v16, 16  ;;  %v570_v33 = vcvt.s32.f32 %v568_v19 }
 0x1b2   :  { %v626_v49 = vcvt.s32.f32 %v624_v22 }
 0x1b3   :  { %768 = vmin.xlane.f32.xlu1 %v2223_v21  ;;  %v2227_v25 = vcvt.s32.f32 %v751_v24 }
 0x1b5   :  { %754 = vmin.xlane.f32.xlu0 %v2227_v25 }
 0x220   :  { %v2233_v31 = vpop.xlane.xlu1 %572 }
 0x221   :  { %vm574_vm2 = vcmp.eq.f32.partialorder %v2112_v29, %v2233_v31  ;;  %v610_v29 = vand.u32 65535, %v2140_v32  ;;  %v579_v22 = vcvt.f32.s32 %v2233_v31 }
 0x222   :  { %v2238_v36 = vpop.xlane.xlu0 %558  ;;  %v575_v38 = vsel %vm574_vm2, %v570_v33, inf }
 0x223   :  { %576 = vmin.xlane.f32.xlu1 %v575_v38  ;;  %vm560_vm3 = vcmp.eq.f32.partialorder %v2120_v18, %v2238_v36  ;;  %v652_v18 = vand.u32 65535, %v2148_v37  ;;  %v612_v53 = vcvt.s32.f32 %v610_v29 }
 0x224   :  { %v2243_v26 = vpop.xlane.xlu1 %600  ;;  %v561_v14 = vsel %vm560_vm3, %v556_v40, inf  ;;  %v782_v40 = vadd.s32 4294967288, %v2100_v20  ;;  %vm787_vm3 = vcmask 130112  }
 0x225   :  { %562 = vmin.xlane.f32.xlu0 %v561_v14  ;;  %vm602_vm4 = vcmp.eq.f32.partialorder %v2128_v35, %v2243_v26  ;;  %v638_v35 = vand.u32 65535, %v2156_v42  ;;  %v654_v57 = vcvt.s32.f32 %v652_v18  ;;  %v565_v14 = vcvt.f32.s32 %v2238_v36 }
 0x226   :  { %v2248_v34 = vpop.xlane.xlu0 %586  ;;  %v603_v44 = vsel %vm602_vm4, %v598_v41, inf  ;;  %vm794_vm4 = vcmask 195712  }
 0x227   :  { %604 = vmin.xlane.f32.xlu1 %v603_v44  ;;  %vm588_vm5 = vcmp.eq.f32.partialorder %v2136_v39, %v2248_v34  ;;  %v680_v39 = vand.u32 65535, %v2164_v46  ;;  %v640_v61 = vcvt.s32.f32 %v638_v35  ;;  %v593_v41 = vcvt.f32.s32 %v2248_v34 }
 0x228   :  { %v2253_v28 = vpop.xlane.xlu1 %628  ;;  %v589_v48 = vsel %vm588_vm5, %v584_v45, inf  ;;  %v566_v31 = vshll.u32 %v565_v14, 16  ;;  %vm801_vm5 = vcmask 261312  }
 0x229   :  { %590 = vmin.xlane.f32.xlu0 %v589_v48  ;;  %vm630_vm6 = vcmp.eq.f32.partialorder %v2144_v43, %v2253_v28  ;;  %v666_v43 = vand.u32 65535, %v2172_v51  ;;  %v682_v0 = vcvt.s32.f32 %v680_v39  ;;  %v635_v29 = vcvt.f32.s32 %v2253_v28 }
 0x22a   :  { %v2258_v32 = vpop.xlane.xlu0 %614  ;;  %v631_v52 = vsel %vm630_vm6, %v626_v49, inf  ;;  %v580_v48 = vshll.u32 %v579_v22, 16  ;;  %v594_v49 = vshll.u32 %v593_v41, 16  ;;  %v2342_v39 = vadd.s32 4294967280, %v2100_v20 }
 0x22b   :  { %632 = vmin.xlane.f32.xlu1 %v631_v52  ;;  %vm616_vm7 = vcmp.eq.f32.partialorder %v2152_v47, %v2258_v32  ;;  %v708_v47 = vand.u32 65535, %v2180_v56  ;;  %v668_v4 = vcvt.s32.f32 %v666_v43  ;;  %v736_v56 = vand.u32 65535, %v2196_v1 }
 0x22c   :  { %v2263_v37 = vpop.xlane.xlu1 %656  ;;  %v617_v55 = vsel %vm616_vm7, %v612_v53, inf  ;;  %v764_v1 = vand.u32 65535, %v2212_v11  ;;  %v621_v44 = vcvt.f32.s32 %v2258_v32  ;;  %v2332_v28 = vshll.u32 %v635_v29, 16 }
 0x22d   :  { %618 = vmin.xlane.f32.xlu0 %v617_v55  ;;  %vm658_vm8 = vcmp.eq.f32.partialorder %v2160_v50, %v2263_v37  ;;  %v694_v50 = vand.u32 65535, %v2188_v60  ;;  %v710_v60 = vcvt.s32.f32 %v708_v47  ;;  %v738_v19 = vcvt.s32.f32 %v736_v56 }
 0x22e   :  { %v2268_v42 = vpop.xlane.xlu0 %642  ;;  %v659_v59 = vsel %vm658_vm8, %v654_v57, inf  ;;  %v766_v33 = vcvt.s32.f32 %v764_v1  ;;  %v2334_v35 = vshll.u32 %v621_v44, 16  ;;  %v2348_v57 = vadd.s32 4294967256, %v2100_v20 }
 0x22f   :  { %660 = vmin.xlane.f32.xlu1 %v659_v59  ;;  %vm644_vm9 = vcmp.eq.f32.partialorder %v2168_v54, %v2268_v42  ;;  %v1698_v54 = vmov 0.0   ;;  %v696_v13 = vcvt.s32.f32 %v694_v50  ;;  %v649_v45 = vcvt.f32.s32 %v2268_v42 }
 0x230   :  { %v2273_v46 = vpop.xlane.xlu1 %684  ;;  %v645_v63 = vsel %vm644_vm9, %v640_v61, inf  ;;  %1312 = vst [vmem:[%s2698_s6] sm:$0x1] %v1698_v54  ;;  %v2357_v61 = vadd.s32 4294967264, %v2100_v20  ;;  %vm808_vm7 = vcmask 326912   ;;  %vm815_vm9 = vcmask 392512  }
 0x231   :  { %646 = vmin.xlane.f32.xlu0 %v645_v63  ;;  %vm686_vm10 = vcmp.eq.f32.partialorder %v2176_v58, %v2273_v46  ;;  %v2338_v52 = vshll.u32 %v649_v45, 16  ;;  %v2402_v41 = vadd.s32 4294967208, %v2100_v20  ;;  %v2405_v29 = vadd.s32 4294967216, %v2100_v20 }
 0x232   :  { %v2278_v51 = vpop.xlane.xlu0 %670  ;;  %v687_v3 = vsel %vm686_vm10, %v682_v0, inf  ;;  %v2362_v0 = vadd.s32 4294967240, %v2100_v20 }
 0x233   :  { %688 = vmin.xlane.f32.xlu1 %v687_v3  ;;  %vm672_vm11 = vcmp.eq.f32.partialorder %v2184_v62, %v2278_v51  ;;  %v677_v36 = vcvt.f32.s32 %v2278_v51 }
 0x234   :  { %v2287_v8 = vpop.xlane.xlu1 %712  ;;  %v673_v58 = vsel %vm672_vm11, %v668_v4, inf  ;;  %vm822_vm11 = vcmask 458112  }
 0x235   :  { %674 = vmin.xlane.f32.xlu0 %v673_v58  ;;  %vm714_vm12 = vcmp.eq.f32.partialorder %v2192_v2, %v2287_v8  ;;  %v750_v2 = vand.u32 65535, %v2220_v16  ;;  %v719_v53 = vcvt.f32.s32 %v2287_v8  ;;  %v2352_v42 = vshll.u32 %v677_v36, 16 }
 0x236   :  { %v2292_v12 = vpop.xlane.xlu0 %698  ;;  %v715_v62 = vsel %vm714_vm12, %v710_v60, inf  ;;  %v2374_v60 = vadd.s32 4294967248, %v2100_v20 }
 0x237   :  { %716 = vmin.xlane.f32.xlu1 %v715_v62  ;;  %vm700_vm13 = vcmp.eq.f32.partialorder %v2200_v6, %v2292_v12  ;;  %v752_v16 = vcvt.s32.f32 %v750_v2  ;;  %v705_v55 = vcvt.f32.s32 %v2292_v12  ;;  %v2364_v50 = vshll.u32 %v719_v53, 16 }
 0x238   :  { %v2297_v17 = vpop.xlane.xlu1 %740  ;;  %v701_v24 = vsel %vm700_vm13, %v696_v13, inf  ;;  %vm829_vm13 = vcmask 523712  }
 0x239   :  { %702 = vmin.xlane.f32.xlu0 %v701_v24  ;;  %vm742_vm14 = vcmp.eq.f32.partialorder %v2208_v10, %v2297_v17  ;;  %v747_v47 = vcvt.f32.s32 %v2297_v17  ;;  %v2369_v56 = vshll.u32 %v705_v55, 16 }
 0x23a   :  { %v2302_v7 = vpop.xlane.xlu0 %726  ;;  %v743_v27 = vsel %vm742_vm14, %v738_v19, inf }
 0x23b   :  { %744 = vmin.xlane.f32.xlu1 %v743_v27  ;;  %vm728_vm15 = vcmp.eq.f32.partialorder %v2216_v15, %v2302_v7  ;;  %v2315_v15 = vshrl.u32 %v520_v5, 7  ;;  %v691_v5 = vcvt.f32.s32 %v2273_v46  ;;  %v733_v46 = vcvt.f32.s32 %v2302_v7 }
 0x23c   :  { %v2306_v6 = vpop.xlane.xlu1 %768  ;;  %v729_v11 = vsel %vm728_vm15, %v724_v30, inf  ;;  %v2378_v13 = vshll.u32 %v747_v47, 16  ;;  %v2388_v30 = vadd.s32 4294967224, %v2100_v20  ;;  %v2429_v47 = vadd.s32 4294967192, %v2100_v20 }
 0x23d   :  { %730 = vmin.xlane.f32.xlu0 %v729_v11  ;;  %vm770_vm1 = vcmp.eq.f32.partialorder %v2223_v21, %v2306_v6  ;;  %v607_v21 = vcvt.f32.s32 %v2243_v26  ;;  %v785_v18 = vsub.s32 %v782_v40, %v2315_v15  ;;  %v2330_v26 = vadd.s32 4294967272, %v2100_v20 }
 0x23e   :  { %v2310_v23 = vpop.xlane.xlu0 %754  ;;  %v771_v10 = vsel %vm770_vm1, %v766_v33, inf  ;;  %v780_v43 = vsub.s32 %v2100_v20, %v2315_v15  ;;  %v775_v51 = vcvt.f32.s32 %v2306_v6  ;;  %v792_v4 = vsub.s32 %v2342_v39, %v2315_v15 }
 0x23f   :  { %772 = vmin.xlane.f32.xlu1 %v771_v10  ;;  %vm756_vm2 = vcmp.eq.f32.partialorder %v2227_v25, %v2310_v23  ;;  %v663_v25 = vcvt.f32.s32 %v2263_v37  ;;  %v608_v34 = vshll.u32 %v607_v21, 16  ;;  %v2344_v37 = vshll.u32 %v691_v5, 16 }
 0x240   :  { %v757_v38 = vsel %vm756_vm2, %v752_v16, inf  ;;  %v799_v59 = vsub.s32 %v2330_v26, %v2315_v15  ;;  %v813_v58 = vsub.s32 %v2348_v57, %v2315_v15  ;;  %v806_v62 = vsub.s32 %v2357_v61, %v2315_v15 }
 0x241   :  { %758 = vmin.xlane.f32.xlu0 %v757_v38  ;;  %v2336_v32 = vshll.u32 %v663_v25, 16  ;;  %v2380_v1 = vshll.u32 %v733_v46, 16  ;;  %v761_v17 = vcvt.f32.s32 %v2310_v23  ;;  %v827_v19 = vsub.s32 %v2362_v0, %v2315_v15 }
 0x242   :  { %v2385_v2 = vshll.u32 %v775_v51, 16  ;;  %v820_v33 = vsub.s32 %v2374_v60, %v2315_v15  ;;  %v2394_v23 = vadd.s32 4294967232, %v2100_v20  ;;  %v1699_v21 = vmov 1.0  }
 0x243   :  { %v2397_v40 = vshll.u32 %v761_v17, 16  ;;  %v855_v61 = vsub.s32 %v2402_v41, %v2315_v15  ;;  %v848_v26 = vsub.s32 %v2405_v29, %v2315_v15  ;;  %vm836_vm15 = vcmask 589312  }
 0x244   :  { %v834_v36 = vsub.s32 %v2394_v23, %v2315_v15  ;;  %vm843_vm2 = vcmask 654912   ;;  %v2458_v57 = vadd.s32 4294967200, %v2100_v20 }
 0x2ac   :  { %v577_v63 = vpop.xlane.xlu1 %576 }
 0x2ad   :  { %v578_v3 = vcvt.f32.s32 %v577_v63 }
 0x2ae   :  { %v563_v8 = vpop.xlane.xlu0 %562 }
 0x2af   :  { %v581_v9 = vadd.s32 %v580_v48, %v578_v3  ;;  %v564_v12 = vcvt.f32.s32 %v563_v8 }
 0x2b0   :  { %v605_v24 = vpop.xlane.xlu1 %604 }
 0x2b1   :  { %v606_v7 = vcvt.f32.s32 %v605_v24  ;;  %v567_v27 = vadd.s32 %v566_v31, %v564_v12  ;;  %v786_v6 = vrot.slane %v581_v9, %v785_v18  ;;  %vm889_vm6 = vcmp.eq.s32.totalorder %v2100_v20, %v581_v9 }
 0x2b2   :  { %v591_v11 = vpop.xlane.xlu0 %590  ;;  %v1448_v5 = vsel %vm889_vm6, 1.0, %v1698_v54  ;;  %v841_v31 = vsub.s32 %v2388_v30, %v2315_v15  ;;  %v873_v30 = vadd.s32 4294967184, %v2100_v20 }
 0x2b3   :  { %v609_v10 = vadd.s32 %v608_v34, %v606_v7  ;;  %v592_v16 = vcvt.f32.s32 %v591_v11  ;;  %v781_v38 = vrot.slane %v567_v27, %v780_v43  ;;  %vm888_vm8 = vcmp.eq.s32.totalorder %v2100_v20, %v567_v27 }
 0x2b4   :  { %v633_v22 = vpop.xlane.xlu1 %632  ;;  %v1447_v14 = vsel %vm888_vm8, 1.0, %v1698_v54  ;;  %1631 = vmatprep.mubr.msk.f32.mxu1 %vm888_vm8, %v1699_v21  ;;  %v869_v27 = vsub.s32 %v2429_v47, %v2315_v15  ;;  %vm864_vm8 = vcmask 851712  }
 0x2b5   :  { %v595_v44 = vadd.s32 %v594_v49, %v592_v16  ;;  %v634_v25 = vcvt.f32.s32 %v633_v22  ;;  %v788_v45 = vsel %vm787_vm3, %v786_v6, %v781_v38  ;;  %1632 = vmatmul.mubr.msk.f32.vlgmr.msra.gmra.mxu1 %vm889_vm6, %v1699_v21  ;;  %v1285_v18 = vadd.f32 %v1448_v5, %v1447_v14 }
 0x2b6   :  { %v619_v48 = vpop.xlane.xlu0 %618  ;;  %vm891_vm10 = vcmp.eq.s32.totalorder %v2100_v20, %v609_v10  ;;  %v800_v39 = vrot.slane %v609_v10, %v799_v59  ;;  %vm857_vm6 = vcmask 786112  }
 0x2b7   :  { %v793_v34 = vrot.slane %v595_v44, %v792_v4  ;;  %v637_v49 = vadd.s32 %v2332_v28, %v634_v25  ;;  %v620_v53 = vcvt.f32.s32 %v619_v48  ;;  %vm890_vm12 = vcmp.eq.s32.totalorder %v2100_v20, %v595_v44 }
 0x2b8   :  { %v661_v55 = vpop.xlane.xlu1 %660  ;;  %v1449_v43 = vsel %vm890_vm12, 1.0, %v1698_v54  ;;  %1634 = vmatprep.mubr.msk.f32.mxu1 %vm890_vm12, %v1699_v21  ;;  %v1450_v3 = vsel %vm891_vm10, 1.0, %v1698_v54  ;;  %vm871_vm12 = vcmask 917312  }
 0x2b9   :  { %v795_v28 = vsel %vm794_vm4, %v793_v34, %v788_v45  ;;  %v623_v46 = vadd.s32 %v2334_v35, %v620_v53  ;;  %v662_v63 = vcvt.f32.s32 %v661_v55  ;;  %1635 = vmatmul.mubr.msk.f32.gmra.mxu1 %vm891_vm10, %v1699_v21  ;;  %v1286_v51 = vadd.f32 %v1449_v43, %v1285_v18 }
 0x2ba   :  { %v802_v59 = vsel %vm801_vm5, %v800_v39, %v795_v28  ;;  %v647_v4 = vpop.xlane.xlu0 %646  ;;  %vm893_vm14 = vcmp.eq.s32.totalorder %v2100_v20, %v637_v49  ;;  %v814_v12 = vrot.slane %v637_v49, %v813_v58  ;;  %vm850_vm4 = vcmask 720512  }
 0x2bb   :  { %v807_v35 = vrot.slane %v623_v46, %v806_v62  ;;  %v665_v8 = vadd.s32 %v2336_v32, %v662_v63  ;;  %v648_v9 = vcvt.f32.s32 %v647_v4  ;;  %vm892_vm1 = vcmp.eq.s32.totalorder %v2100_v20, %v623_v46 }
 0x2bc   :  { %v1287_v17 = vadd.f32 %v1450_v3, %v1286_v51  ;;  %v689_v24 = vpop.xlane.xlu1 %688  ;;  %v1451_v7 = vsel %vm892_vm1, 1.0, %v1698_v54  ;;  %1637 = vmatprep.mubr.msk.f32.mxu1 %vm892_vm1, %v1699_v21  ;;  %v1452_v10 = vsel %vm893_vm14, 1.0, %v1698_v54  ;;  %v880_v28 = vadd.s32 4294967176, %v2100_v20 }
 0x2bd   :  { %v809_v62 = vsel %vm808_vm7, %v807_v35, %v802_v59  ;;  %v651_v32 = vadd.s32 %v2338_v52, %v648_v9  ;;  %v690_v6 = vcvt.f32.s32 %v689_v24  ;;  %1638 = vmatmul.mubr.msk.f32.gmra.mxu1 %vm893_vm14, %v1699_v21  ;;  %vm895_vm3 = vcmp.eq.s32.totalorder %v2100_v20, %v665_v8 }
 0x2be   :  { %v816_v58 = vsel %vm815_vm9, %v814_v12, %v809_v62  ;;  %v1288_v11 = vadd.f32 %v1451_v7, %v1287_v17  ;;  %v675_v16 = vpop.xlane.xlu0 %674  ;;  %v828_v14 = vrot.slane %v665_v8, %v827_v19  ;;  %v1454_v18 = vsel %vm895_vm3, 1.0, %v1698_v54 }
 0x2bf   :  { %v821_v52 = vrot.slane %v651_v32, %v820_v33  ;;  %v693_v38 = vadd.s32 %v2344_v37, %v690_v6  ;;  %v676_v22 = vcvt.f32.s32 %v675_v16  ;;  %vm894_vm5 = vcmp.eq.s32.totalorder %v2100_v20, %v651_v32 }
 0x2c0   :  { %v1289_v44 = vadd.f32 %v1452_v10, %v1288_v11  ;;  %v717_v25 = vpop.xlane.xlu1 %716  ;;  %v1453_v45 = vsel %vm894_vm5, 1.0, %v1698_v54  ;;  %1640 = vmatprep.mubr.msk.f32.mxu1 %vm894_vm5, %v1699_v21  ;;  %v862_v37 = vsub.s32 %v2458_v57, %v2315_v15  ;;  %v883_v8 = vsub.s32 %v880_v28, %v2315_v15 }
 0x2c1   :  { %v823_v5 = vsel %vm822_vm11, %v821_v52, %v816_v58  ;;  %v679_v60 = vadd.s32 %v2352_v42, %v676_v22  ;;  %v718_v33 = vcvt.f32.s32 %v717_v25  ;;  %1641 = vmatmul.mubr.msk.f32.gmra.mxu1 %vm895_vm3, %v1699_v21  ;;  %vm897_vm7 = vcmp.eq.s32.totalorder %v2100_v20, %v693_v38 }
 0x2c2   :  { %v830_v0 = vsel %vm829_vm13, %v828_v14, %v823_v5  ;;  %v1290_v19 = vadd.f32 %v1453_v45, %v1289_v44  ;;  %v703_v48 = vpop.xlane.xlu0 %702  ;;  %v842_v53 = vrot.slane %v693_v38, %v841_v31  ;;  %v1456_v63 = vsel %vm897_vm7, 1.0, %v1698_v54 }
 0x2c3   :  { %v835_v42 = vrot.slane %v679_v60, %v834_v36  ;;  %v721_v34 = vadd.s32 %v2364_v50, %v718_v33  ;;  %v704_v49 = vcvt.f32.s32 %v703_v48  ;;  %vm896_vm9 = vcmp.eq.s32.totalorder %v2100_v20, %v679_v60 }
 0x2c4   :  { %v1291_v39 = vadd.f32 %v1454_v18, %v1290_v19  ;;  %v745_v55 = vpop.xlane.xlu1 %744  ;;  %v1455_v43 = vsel %vm896_vm9, 1.0, %v1698_v54  ;;  %1643 = vmatprep.mubr.msk.f32.mxu1 %vm896_vm9, %v1699_v21  ;;  %v876_v24 = vsub.s32 %v873_v30, %v2315_v15  ;;  %vm885_vm1 = vcmask 1048512   ;;  %v1660_v18 = vld [vmem:[%s2692_s0 + $0x8] sm:$0xff] }
 0x2c5   :  { %v837_v23 = vsel %vm836_vm15, %v835_v42, %v830_v0  ;;  %v707_v36 = vadd.s32 %v2369_v56, %v704_v49  ;;  %v746_v50 = vcvt.f32.s32 %v745_v55  ;;  %1644 = vmatmul.mubr.msk.f32.gmra.mxu1 %vm897_vm7, %v1699_v21  ;;  %vm899_vm10 = vcmp.eq.s32.totalorder %v2100_v20, %v721_v34 }
 0x2c6   :  { %v844_v31 = vsel %vm843_vm2, %v842_v53, %v837_v23  ;;  %v1292_v46 = vadd.f32 %v1455_v43, %v1291_v39  ;;  %v731_v59 = vpop.xlane.xlu0 %730  ;;  %v856_v4 = vrot.slane %v721_v34, %v855_v61  ;;  %v1458_v17 = vsel %vm899_vm10, 1.0, %v1698_v54  ;;  %v1661_v34 = vld [vmem:[%s2692_s0] sm:$0xff]  ;;  %v1662_v43 = vld [vmem:[%s2692_s0 + $0x18] sm:$0xff] }
 0x2c7   :  { %v849_v56 = vrot.slane %v707_v36, %v848_v26  ;;  %v749_v51 = vadd.s32 %v2378_v13, %v746_v50  ;;  %v732_v3 = vcvt.f32.s32 %v731_v59  ;;  %vm898_vm11 = vcmp.eq.s32.totalorder %v2100_v20, %v707_v36  ;;  %v1663_v50 = vld [vmem:[%s2692_s0 + $0x10] sm:$0xff] }
 0x2c8   :  { %v1293_v35 = vadd.f32 %v1456_v63, %v1292_v46  ;;  %v773_v9 = vpop.xlane.xlu1 %772  ;;  %v1457_v12 = vsel %vm898_vm11, 1.0, %v1698_v54  ;;  %1646 = vmatprep.mubr.msk.f32.mxu1 %vm898_vm11, %v1699_v21  ;;  %vm878_vm15 = vcmask 982912  }
 0x2c9   :  { %v851_v29 = vsel %vm850_vm4, %v849_v56, %v844_v31  ;;  %v735_v26 = vadd.s32 %v2380_v1, %v732_v3  ;;  %v774_v13 = vcvt.f32.s32 %v773_v9  ;;  %1647 = vmatmul.mubr.msk.f32.gmra.mxu1 %vm899_vm10, %v1699_v21  ;;  %v870_v1 = vrot.slane %v749_v51, %v869_v27  ;;  %v1664_v56 = vld [vmem:[%s2692_s0 + $0x28] sm:$0xff] }
 0x2ca   :  { %v858_v41 = vsel %vm857_vm6, %v856_v4, %v851_v29  ;;  %v1294_v61 = vadd.f32 %v1457_v12, %v1293_v35  ;;  %v759_v7 = vpop.xlane.xlu0 %758  ;;  %vm901_vm14 = vcmp.eq.s32.totalorder %v2100_v20, %v749_v51  ;;  %vm1310_vm4 = vcmask 0  }
 0x2cb   :  { %v863_v62 = vrot.slane %v735_v26, %v862_v37  ;;  %v760_v32 = vcvt.f32.s32 %v759_v7  ;;  %vm900_vm13 = vcmp.eq.s32.totalorder %v2100_v20, %v735_v26  ;;  %v777_v6 = vadd.s32 %v2385_v2, %v774_v13  ;;  %1311 = vst.msk [vmem:[#allocation2] sm:$0x1] %vm1310_vm4, %v1698_v54 }
 0x2cc   :  { %v1295_v57 = vadd.f32 %v1458_v17, %v1294_v61  ;;  %v1459_v58 = vsel %vm900_vm13, 1.0, %v1698_v54  ;;  %1649 = vmatprep.mubr.msk.f32.mxu1 %vm900_vm13, %v1699_v21  ;;  %v1460_v2 = vsel %vm901_vm14, 1.0, %v1698_v54  ;;  %v1666_v61 = vld [vmem:[%s2692_s0 + $0x38] sm:$0xff] }
 0x2cd   :  { %v865_v11 = vsel %vm864_vm8, %v863_v62, %v858_v41  ;;  %v763_v10 = vadd.s32 %v2397_v40, %v760_v32  ;;  %1650 = vmatmul.mubr.msk.f32.gmra.mxu1 %vm901_vm14, %v1699_v21  ;;  %v884_v16 = vrot.slane %v777_v6, %v883_v8  ;;  %vm903_vm3 = vcmp.eq.s32.totalorder %v2100_v20, %v777_v6  ;;  %v1665_v8 = vld [vmem:[%s2692_s0 + $0x20] sm:$0xff]  ;;  %v1667_v62 = vld [vmem:[%s2692_s0 + $0x30] sm:$0xff] }
 0x2ce   :  { %v872_v15 = vsel %vm871_vm12, %v870_v1, %v865_v11  ;;  %v1296_v47 = vadd.f32 %v1459_v58, %v1295_v57  ;;  %v1462_v44 = vsel %vm903_vm3, 1.0, %v1698_v54 }
 0x2cf   :  { %v877_v27 = vrot.slane %v763_v10, %v876_v24  ;;  %vm902_vm2 = vcmp.eq.s32.totalorder %v2100_v20, %v763_v10  ;;  %v1318_v20 = vld [vmem:[%s2698_s6] sm:$0x1] }
 0x2d0   :  { %v1297_v52 = vadd.f32 %v1460_v2, %v1296_v47  ;;  %v1461_v38 = vsel %vm902_vm2, 1.0, %v1698_v54  ;;  %1652 = vmatprep.mubr.msk.f32.mxu1 %vm902_vm2, %v1699_v21 }
 0x2d1   :  { %v879_v40 = vsel %vm878_vm15, %v877_v27, %v872_v15  ;;  %1653 = vmatmul.mubr.msk.f32.gmra.mxu1 %vm903_vm3, %v1699_v21  ;;  %v1668_v15 = vld [vmem:[%s2692_s0 + $0x48] sm:$0xff] }
 0x2d2   :  { %v886_v22 = vsel %vm885_vm1, %v884_v16, %v879_v40  ;;  %v1298_v14 = vadd.f32 %v1461_v38, %v1297_v52  ;;  %v1669_v52 = vld [vmem:[%s2692_s0 + $0x40] sm:$0xff] }
 0x2d3   :  { %887 = vst [vmem:[%s2695_s3] sm:$0x1] %v886_v22 }
 0x2d4   :  { %v1299_v25 = vadd.f32 %v1462_v44, %v1298_v14 }
 0x2d6   :  { %v1300_v45 = vrot.slane %v1299_v25, 4 }
 0x2d8   :  { %v1301_v5 = vadd.f32 %v1300_v45, %v1299_v25  ;;  %v1670_v45 = vld [vmem:[%s2692_s0 + $0x58] sm:$0xff] }
 0x2da   :  { %v1302_v60 = vrot.slane %v1301_v5, 2 }
 0x2dc   :  { %v1303_v33 = vadd.f32 %v1302_v60, %v1301_v5 }
 0x2de   :  { %v1304_v37 = vrot.slane %v1303_v33, 1 }
 0x2e0   :  { %v1305_v0 = vadd.f32 %v1304_v37, %v1303_v33 }
 0x2e2   :  { %v1319_v21 = vadd.f32 %v1318_v20, %v1305_v0  ;;  %v1671_v20 = vld [vmem:[%s2692_s0 + $0x50] sm:$0xff] }
 0x2e4   :  { %1320 = vst [vmem:[%s2698_s6] sm:$0x1] %v1319_v21 }
 0x375   :  { %v1633_v19 = vpop.f32.mrf.mxu1 }
 0x376   :  { %1082 = vst.msk [vmem:[%s2696_s4 + $0x8] sm:$0xff] %vm128_vm0, %v1633_v19  ;;  %v1182_v48 = vsub.f32 %v1633_v19, %v1660_v18 }
 0x377   :  { %v1002_v42 = vpop.f32.mrf.mxu1 }
 0x378   :  { %1081 = vst.msk [vmem:[%s2696_s4] sm:$0xff] %vm128_vm0, %v1002_v42  ;;  %v1181_v49 = vsub.f32 %v1002_v42, %v1661_v34  ;;  %v1198_v39 = vmul.f32 %v1182_v48, %v1182_v48  ;;  %v1672_v34 = vld [vmem:[%s2692_s0 + $0x68] sm:$0xff] }
 0x379   :  { %v1636_v53 = vpop.f32.mrf.mxu1 }
 0x37a   :  { %v1197_v55 = vmul.f32 %v1181_v49, %v1181_v49  ;;  %1084 = vst.msk [vmem:[%s2696_s4 + $0x18] sm:$0xff] %vm128_vm0, %v1636_v53  ;;  %v1184_v28 = vsub.f32 %v1636_v53, %v1662_v43  ;;  %v1230_v46 = vsel %vm128_vm0, %v1198_v39, 0.0  ;;  %v1673_v43 = vld [vmem:[%s2692_s0 + $0x60] sm:$0xff] }
 0x37b   :  { %v1012_v23 = vpop.f32.mrf.mxu1 }
 0x37c   :  { %v1229_v36 = vsel %vm128_vm0, %v1197_v55, 0.0  ;;  %1083 = vst.msk [vmem:[%s2696_s4 + $0x10] sm:$0xff] %vm128_vm0, %v1012_v23  ;;  %v1183_v30 = vsub.f32 %v1012_v23, %v1663_v50  ;;  %v1200_v63 = vmul.f32 %v1184_v28, %v1184_v28 }
 0x37d   :  { %v1639_v31 = vpop.f32.mrf.mxu1  ;;  %v1231_v3 = vadd.f32 %v1230_v46, %v1229_v36  ;;  %v1674_v46 = vld [vmem:[%s2692_s0 + $0x78] sm:$0xff] }
 0x37e   :  { %v1199_v59 = vmul.f32 %v1183_v30, %v1183_v30  ;;  %1086 = vst.msk [vmem:[%s2696_s4 + $0x28] sm:$0xff] %vm128_vm0, %v1639_v31  ;;  %v1186_v51 = vsub.f32 %v1639_v31, %v1664_v56  ;;  %v1234_v26 = vsel %vm128_vm0, %v1200_v63, 0.0 }
 0x37f   :  { %v1022_v4 = vpop.f32.mrf.mxu1 }
 0x380   :  { %v1232_v35 = vsel %vm128_vm0, %v1199_v59, 0.0  ;;  %1085 = vst.msk [vmem:[%s2696_s4 + $0x20] sm:$0xff] %vm128_vm0, %v1022_v4  ;;  %v1185_v9 = vsub.f32 %v1022_v4, %v1665_v8  ;;  %v1202_v13 = vmul.f32 %v1186_v51, %v1186_v51 }
 0x381   :  { %v1233_v12 = vadd.f32 %v1232_v35, %v1231_v3  ;;  %v1642_v29 = vpop.f32.mrf.mxu1  ;;  %v1675_v3 = vld [vmem:[%s2692_s0 + $0x70] sm:$0xff]  ;;  %s1700_s0 = smov [#allocation2]  }
 0x382   :  { %v1201_v41 = vmul.f32 %v1185_v9, %v1185_v9  ;;  %1088 = vst.msk [vmem:[%s2696_s4 + $0x38] sm:$0xff] %vm128_vm0, %v1642_v29  ;;  %v1188_v17 = vsub.f32 %v1642_v29, %v1666_v61  ;;  %v1238_v58 = vsel %vm128_vm0, %v1202_v13, 0.0 }
 0x383   :  { %v1235_v24 = vadd.f32 %v1234_v26, %v1233_v12  ;;  %v1032_v7 = vpop.f32.mrf.mxu1 }
 0x384   :  { %v1236_v1 = vsel %vm128_vm0, %v1201_v41, 0.0  ;;  %1087 = vst.msk [vmem:[%s2696_s4 + $0x30] sm:$0xff] %vm128_vm0, %v1032_v7  ;;  %v1187_v32 = vsub.f32 %v1032_v7, %v1667_v62  ;;  %v1204_v11 = vmul.f32 %v1188_v17, %v1188_v17 }
 0x385   :  { %v1237_v6 = vadd.f32 %v1236_v1, %v1235_v24  ;;  %v1645_v57 = vpop.f32.mrf.mxu1 }
 0x386   :  { %v1203_v10 = vmul.f32 %v1187_v32, %v1187_v32  ;;  %1090 = vst.msk [vmem:[%s2696_s4 + $0x48] sm:$0xff] %vm128_vm0, %v1645_v57  ;;  %v1190_v47 = vsub.f32 %v1645_v57, %v1668_v15  ;;  %v1242_v14 = vsel %vm128_vm0, %v1204_v11, 0.0  ;;  %v1313_v57 = vld [vmem:[#allocation2] sm:$0x1] }
 0x387   :  { %v1239_v27 = vadd.f32 %v1238_v58, %v1237_v6  ;;  %v1042_v2 = vpop.f32.mrf.mxu1 }
 0x388   :  { %v1240_v16 = vsel %vm128_vm0, %v1203_v10, 0.0  ;;  %1089 = vst.msk [vmem:[%s2696_s4 + $0x40] sm:$0xff] %vm128_vm0, %v1042_v2  ;;  %v1189_v38 = vsub.f32 %v1042_v2, %v1669_v52  ;;  %v1206_v44 = vmul.f32 %v1190_v47, %v1190_v47 }
 0x389   :  { %v1241_v40 = vadd.f32 %v1240_v16, %v1239_v27  ;;  %v1648_v22 = vpop.f32.mrf.mxu1 }
 0x38a   :  { %v1205_v25 = vmul.f32 %v1189_v38, %v1189_v38  ;;  %1092 = vst.msk [vmem:[%s2696_s4 + $0x58] sm:$0xff] %vm128_vm0, %v1648_v22  ;;  %v1192_v5 = vsub.f32 %v1648_v22, %v1670_v45  ;;  %v1246_v18 = vsel %vm128_vm0, %v1206_v44, 0.0 }
 0x38b   :  { %v1243_v60 = vadd.f32 %v1242_v14, %v1241_v40  ;;  %v1052_v33 = vpop.f32.mrf.mxu1 }
 0x38c   :  { %v1244_v37 = vsel %vm128_vm0, %v1205_v25, 0.0  ;;  %1091 = vst.msk [vmem:[%s2696_s4 + $0x50] sm:$0xff] %vm128_vm0, %v1052_v33  ;;  %v1191_v0 = vsub.f32 %v1052_v33, %v1671_v20  ;;  %v1208_v48 = vmul.f32 %v1192_v5, %v1192_v5 }
 0x38d   :  { %v1245_v21 = vadd.f32 %v1244_v37, %v1243_v60  ;;  %v1651_v19 = vpop.f32.mrf.mxu1 }
 0x38e   :  { %v1207_v42 = vmul.f32 %v1191_v0, %v1191_v0  ;;  %1094 = vst.msk [vmem:[%s2696_s4 + $0x68] sm:$0xff] %vm128_vm0, %v1651_v19  ;;  %v1194_v49 = vsub.f32 %v1651_v19, %v1672_v34  ;;  %v1250_v50 = vsel %vm128_vm0, %v1208_v48, 0.0 }
 0x38f   :  { %v1247_v53 = vadd.f32 %v1246_v18, %v1245_v21  ;;  %v1062_v39 = vpop.f32.mrf.mxu1 }
 0x390   :  { %v1248_v55 = vsel %vm128_vm0, %v1207_v42, 0.0  ;;  %1093 = vst.msk [vmem:[%s2696_s4 + $0x60] sm:$0xff] %vm128_vm0, %v1062_v39  ;;  %v1193_v28 = vsub.f32 %v1062_v39, %v1673_v43  ;;  %v1210_v30 = vmul.f32 %v1194_v49, %v1194_v49 }
 0x391   :  { %v1249_v23 = vadd.f32 %v1248_v55, %v1247_v53  ;;  %v1654_v36 = vpop.f32.mrf.mxu1 }
 0x392   :  { %v1209_v31 = vmul.f32 %v1193_v28, %v1193_v28  ;;  %1096 = vst.msk [vmem:[%s2696_s4 + $0x78] sm:$0xff] %vm128_vm0, %v1654_v36  ;;  %v1196_v63 = vsub.f32 %v1654_v36, %v1674_v46  ;;  %v1254_v8 = vsel %vm128_vm0, %v1210_v30, 0.0 }
 0x393   :  { %v1251_v59 = vadd.f32 %v1250_v50, %v1249_v23  ;;  %v1072_v56 = vpop.f32.mrf.mxu1 }
 0x394   :  { %v1252_v51 = vsel %vm128_vm0, %v1209_v31, 0.0  ;;  %1095 = vst.msk [vmem:[%s2696_s4 + $0x70] sm:$0xff] %vm128_vm0, %v1072_v56  ;;  %v1195_v4 = vsub.f32 %v1072_v56, %v1675_v3  ;;  %v1212_v9 = vmul.f32 %v1196_v63, %v1196_v63  ;;  %s1350_s4 = sshll.u32 %s1700_s0, 4  ;;  %s1351_s4 = int_to_ptr.vmem [resolvable:$true] %s1350_s4 }
 0x395   :  { %v1253_v35 = vadd.f32 %v1252_v51, %v1251_v59  ;;  %s1676_s17 = scalar_lea.vmem %s1351_s4, 16  ;;  %s1680_s18 = scalar_lea.vmem %s1351_s4, 32 }
 0x396   :  { %v1211_v12 = vmul.f32 %v1195_v4, %v1195_v4  ;;  %v1258_v41 = vsel %vm128_vm0, %v1212_v9, 0.0  ;;  %p1677_p0 = scmp.ne.s32.totalorder %s1351_s4, %s1676_s17  ;;  %p1681_p1 = scmp.lt.s32.totalorder %s1351_s4, %s1351_s4 }
 0x397   :  { %v1255_v29 = vadd.f32 %v1254_v8, %v1253_v35  ;;  %p1682_p2 = scmp.lt.s32.totalorder %s1680_s18, %s1676_s17 }
 0x398   :  { %v1256_v26 = vsel %vm128_vm0, %v1211_v12, 0.0 }
 0x399   :  { %v1257_v13 = vadd.f32 %v1256_v26, %v1255_v29  ;;  %p1683_p3 = por %p1682_p2, %p1681_p1 }
 0x39b   :  { %v1259_v61 = vadd.f32 %v1258_v41, %v1257_v13  ;;  %p1684_p4 = pnand %p1683_p3, %p1677_p0 }
 0x39d   :  { %1260 = vadd.xlane.f32.xlu0 %v1259_v61 }
 0x426   :  { %v1261_v17 = vpop.xlane.xlu0 %1260 }
 0x427   :  { %v1262_v24 = vrot.slane %v1261_v17, 4 }
 0x429   :  { %v1263_v7 = vadd.f32 %v1262_v24, %v1261_v17 }
 0x42b   :  { %v1264_v1 = vrot.slane %v1263_v7, 2 }
 0x42d   :  { %v1265_v62 = vadd.f32 %v1264_v1, %v1263_v7 }
 0x42f   :  { %v1266_v32 = vrot.slane %v1265_v62, 1 }
 0x431   :  { %v1267_v6 = vadd.f32 %v1266_v32, %v1265_v62 }
 0x433   :  { %1655 = vpush %v1267_v6 }
 0x464   :  { %s1656_s6 = spop %1655 }
 0x465   :  { %v1314_v58 = vstv %s1656_s6 }
 0x466   :  { %v1315_v11 = vadd.f32 %v1314_v58, %v1313_v57 }
 0x468   :  { %1317 = vst.msk [vmem:[#allocation2] sm:$0x1] %vm1310_vm4, %v1315_v11 }
 0x469   :  { %1687 = shalt.err (!%p1684_p4)
}
 0x46a   :  { %1353 = dma.vmem_to_hbm [thread:$0]  %s1351_s4, 16, %s2697_s5, [#allocation3]  }
 0x46b   :  { %1696 = dma.done.wait [#allocation3], 16  }
 0x46c   :  { %1697 = vsyncadd [#allocation3], 4294967280 }
 0x46d   :  { %1387 = vsyncpa [#allocation3], 1 }

</bundles_post_ra>
